<compile_context>
chip_gen: v7x
topology: tpu7x:2x2x1
jax: 0.10.0
libtpu: 0.0.40
codegen_flags: <defaults>
</compile_context>

<pallas_src>
import numpy as np
import jax
import jax.numpy as jnp
from jax.experimental import pallas as pl
from jax.experimental.pallas import tpu as pltpu

FEAT_DIM = 512
CROP_H = (35, 223)      # rows 35:223 -> 188
CROP_W = (32, 220)      # cols 32:220 -> 188
POOL_MID = 112          # face_pool output
POOL_OUT = 7            # synthetic-head spatial reduction


# ----------------------------------------------------------------------------
# Host-side construction of the composed (crop + pool112 + pool7) matrices.
# AdaptiveAvgPool2d is separable/linear: out = P_h @ X @ P_w^T with exact
# PyTorch bin edges start = floor(k*in/out), end = ceil((k+1)*in/out).
# ----------------------------------------------------------------------------
def _adaptive_pool_matrix(in_size, out_size):
    P = np.zeros((out_size, in_size), dtype=np.float64)
    for k in range(out_size):
        start = (k * in_size) // out_size
        end = -((-(k + 1) * in_size) // out_size)      # ceil((k+1)*in/out)
        P[k, start:end] = 1.0 / (end - start)
    return P


def _composed_pool_matrices(H, W, C):
    """Returns numpy (phb, pwt):
       phb : (C*7, C*H)  block-diagonal composed height matrix (crop folded in)
       pwt : (W, 7)      composed width matrix, transposed (crop folded in)
    so that for one sample x (C*H, W):  pooled7[c,o,k] == (phb @ x @ pwt)[c*7+o, k].
    """
    ch0, ch1 = CROP_H
    cw0, cw1 = CROP_W
    ph_c = _adaptive_pool_matrix(POOL_MID, POOL_OUT) @ \
        _adaptive_pool_matrix(ch1 - ch0, POOL_MID)
    ph = np.zeros((POOL_OUT, H), dtype=np.float64)
    ph[:, ch0:ch1] = ph_c
    pw_c = _adaptive_pool_matrix(POOL_MID, POOL_OUT) @ \
        _adaptive_pool_matrix(cw1 - cw0, POOL_MID)
    pw = np.zeros((POOL_OUT, W), dtype=np.float64)
    pw[:, cw0:cw1] = pw_c
    phb = np.zeros((C * POOL_OUT, C * H), dtype=np.float64)
    for c in range(C):
        phb[c * POOL_OUT:(c + 1) * POOL_OUT, c * H:(c + 1) * H] = ph
    return phb, pw.T


def _pick_num_chunks(ch_total, target=4):
    """Largest n <= target with ch_total % n == 0 and chunk % 8 == 0."""
    for n in range(min(target, ch_total), 0, -1):
        if ch_total % n == 0 and (ch_total // n) % 8 == 0:
            return n
    return 1


# ----------------------------------------------------------------------------
# Fused kernel. Grid = (sample i [parallel], chunk c over C*H [arbitrary]).
#   yh_ref / y_ref : (1, chunk, W)        image-row chunk for y_hat / y
#   phb_ref        : (1, C*7, chunk)      bf16 composed height-pool columns
#   pwt_ref        : (W, 7)               f32 composed width-pool matrix^T
#   wk_ref         : (7, C*7, 512)        f32 projection weight, wk[k,r,d]=w[r*7+k,d]
#   o_ref          : (1, 1, 1)            per-sample loss 1 - <f_hat, f_y>
#   tmp_h / tmp_y  : VMEM (C*7, W) f32    chunk accumulators
# ----------------------------------------------------------------------------
def _id_loss_kernel(yh_ref, y_ref, phb_ref, pwt_ref, wk_ref, o_ref,
                    tmp_h, tmp_y):
    c = pl.program_id(1)
    last = pl.num_programs(1) - 1

    @pl.when(c == 0)
    def _():
        tmp_h[...] = jnp.zeros_like(tmp_h)
        tmp_y[...] = jnp.zeros_like(tmp_y)

    # Big matmul, reordered: (C*7, chunk) @ (chunk, W) -> lane-dense (C*7, W).
    phb = phb_ref[0]                                   # bf16
    xh = yh_ref[0].astype(jnp.bfloat16)
    xy = y_ref[0].astype(jnp.bfloat16)
    tmp_h[...] += jnp.dot(phb, xh, preferred_element_type=jnp.float32)
    tmp_y[...] += jnp.dot(phb, xy, preferred_element_type=jnp.float32)

    @pl.when(c == last)
    def _():
        pwt = pwt_ref[...]                             # (W, 7) f32
        pooled_h = jnp.dot(tmp_h[...], pwt,
                           preferred_element_type=jnp.float32)   # (C*7, 7)
        pooled_y = jnp.dot(tmp_y[...], pwt,
                           preferred_element_type=jnp.float32)
        # Projection flat(pooled) @ w without any lane-changing reshape:
        # f[d] = sum_k sum_r pooled[r, k] * wk[k, r, d]   (7 unrolled VPU steps)
        fh = jnp.zeros((1, FEAT_DIM), jnp.float32)
        fy = jnp.zeros((1, FEAT_DIM), jnp.float32)
        for k in range(POOL_OUT):
            wk = wk_ref[k]                             # (C*7, 512)
            fh = fh + jnp.sum(pooled_h[:, k:k + 1] * wk, axis=0, keepdims=True)
            fy = fy + jnp.sum(pooled_y[:, k:k + 1] * wk, axis=0, keepdims=True)
        # ArcFace Backbone's final l2_norm (no epsilon, matching the reference)
        fh = fh * jax.lax.rsqrt(jnp.sum(fh * fh, axis=-1, keepdims=True))
        fy = fy * jax.lax.rsqrt(jnp.sum(fy * fy, axis=-1, keepdims=True))
        o_ref[0] = 1.0 - jnp.sum(fh * fy, axis=-1, keepdims=True)


# ----------------------------------------------------------------------------
# IDLoss.forward(y_hat, y, x) -> scalar loss
# ----------------------------------------------------------------------------
@jax.jit
def id_loss(y_hat, y, x, w):
    N, C, H, W = y_hat.shape
    n_samples = x.shape[0]
    C7 = C * POOL_OUT
    CH = C * H

    # Trace-time constants (numpy -> baked in).
    phb_np, pwt_np = _composed_pool_matrices(H, W, C)
    n_chunks = _pick_num_chunks(CH, target=4)
    chunk = CH // n_chunks
    # Pre-split phb columns into chunks so every block equals its full extents.
    phb_chunks = jnp.asarray(
        phb_np.reshape(C7, n_chunks, chunk).transpose(1, 0, 2), jnp.bfloat16)
    pwt = jnp.asarray(pwt_np, jnp.float32)                         # (W, 7)

    # wk[k, r, d] = w[r*7 + k, d]  (so the kernel never needs a lane reshape)
    wk = w.astype(jnp.float32).reshape(C7, POOL_OUT, FEAT_DIM).transpose(1, 0, 2)

    yh_r = y_hat.reshape(N, CH, W)                      # contiguous, free
    # y_feats.detach(): forward value unchanged; stop the y branch here.
    y_r = jax.lax.stop_gradient(y).reshape(N, CH, W)

    per_sample = pl.pallas_call(
        _id_loss_kernel,
        out_shape=jax.ShapeDtypeStruct((N, 1, 1), jnp.float32),
        grid_spec=pltpu.PrefetchScalarGridSpec(
            num_scalar_prefetch=0,
            grid=(N, n_chunks),
            in_specs=[
                pl.BlockSpec((1, chunk, W), lambda i, c: (i, c, 0)),
                pl.BlockSpec((1, chunk, W), lambda i, c: (i, c, 0)),
                pl.BlockSpec((1, C7, chunk), lambda i, c: (c, 0, 0)),
                pl.BlockSpec((W, POOL_OUT), lambda i, c: (0, 0)),
                pl.BlockSpec((POOL_OUT, C7, FEAT_DIM), lambda i, c: (0, 0, 0)),
            ],
            out_specs=pl.BlockSpec((1, 1, 1), lambda i, c: (i, 0, 0)),
            scratch_shapes=[pltpu.VMEM((C7, W), jnp.float32),
                            pltpu.VMEM((C7, W), jnp.float32)],
        ),
        compiler_params=pltpu.CompilerParams(
            dimension_semantics=("parallel", "arbitrary")),
    )(yh_r, y_r, phb_chunks, pwt, wk)

    # Original loops i in range(x.shape[0]) and divides by that count.
    return jnp.sum(per_sample[:n_samples, 0, 0]) / n_samples


# ----------------------------------------------------------------------------
# Pure-JAX reference (sequential crop -> pool112 -> pool7 -> linear -> l2norm)
# ----------------------------------------------------------------------------
def reference_id_loss(y_hat, y, x, w):
    ph1 = jnp.asarray(_adaptive_pool_matrix(CROP_H[1] - CROP_H[0], POOL_MID),
                      jnp.float32)
    pw1 = jnp.asarray(_adaptive_pool_matrix(CROP_W[1] - CROP_W[0], POOL_MID),
                      jnp.float32)
    p2 = jnp.asarray(_adaptive_pool_matrix(POOL_MID, POOL_OUT), jnp.float32)

    def feats(img):
        v = img[:, :, CROP_H[0]:CROP_H[1], CROP_W[0]:CROP_W[1]]
        v = jnp.einsum('oi,ncij->ncoj', ph1, v)
        v = jnp.einsum('pj,ncoj->ncop', pw1, v)
        v = jnp.einsum('oi,ncij->ncoj', p2, v)
        v = jnp.einsum('pj,ncoj->ncop', p2, v)
        f = v.reshape(v.shape[0], -1) @ w
        return f / jnp.linalg.norm(f, axis=-1, keepdims=True)

    fh, fy = feats(y_hat), feats(y)
    n = x.shape[0]
    return jnp.sum(1.0 - jnp.sum(fh[:n] * fy[:n], axis=-1)) / n


if __name__ == "__main__":
    # Spatial size must be >= 224 for the fixed crop 35:223 / 32:220.
    N, C, H, W = 2, 3, 224, 224
    key = jax.random.PRNGKey(0)
    k1, k2, k3, k4 = jax.random.split(key, 4)
    y_hat = jax.random.normal(k1, (N, C, H, W), jnp.float32)
    y = jax.random.normal(k2, (N, C, H, W), jnp.float32)
    x = jax.random.normal(k3, (N, C, H, W), jnp.float32)

    # Deterministic synthetic projection weight (stand-in for ArcFace weights).
    K = C * POOL_OUT * POOL_OUT
    w = jax.random.normal(k4, (K, FEAT_DIM), jnp.float32) / np.sqrt(K)

    loss = id_loss(y_hat, y, x, w)
    jax.block_until_ready(loss)
    assert loss.shape == () and loss.dtype == jnp.float32

    ref = reference_id_loss(y_hat, y, x, w)
    np.testing.assert_allclose(float(loss), float(ref), rtol=0.0, atol=5e-2)
    print("KERNEL_OK")
</pallas_src>

<mosaic_0001>
module attributes {stable_mosaic.version = 11 : i64} {
  func.func @_id_loss_kernel(%arg0: i32, %arg1: i32, %arg2: memref<1x168x224xf32, #tpu.memory_space<vmem>>, %arg3: memref<1x168x224xf32, #tpu.memory_space<vmem>>, %arg4: memref<1x21x168xbf16, #tpu.memory_space<vmem>>, %arg5: memref<224x7xf32, #tpu.memory_space<vmem>>, %arg6: memref<7x21x512xf32, #tpu.memory_space<vmem>>, %arg7: memref<1x1x1xf32, #tpu.memory_space<vmem>>, %arg8: memref<21x224xf32, #tpu.memory_space<vmem>>, %arg9: memref<21x224xf32, #tpu.memory_space<vmem>>) attributes {dimension_semantics = [#tpu.dimension_semantics<parallel>, #tpu.dimension_semantics<arbitrary>], iteration_bounds = array<i64: 2, 4>, scalar_prefetch = 0 : i64, scratch_operands = 2 : i64, tpu.core_type = #tpu.core_type<tc>, window_params = [{transform_indices = @transform_0, window_bounds = array<i64: 1, 168, 224>}, {transform_indices = @transform_1, window_bounds = array<i64: 1, 168, 224>}, {transform_indices = @transform_2, window_bounds = array<i64: 1, 21, 168>}, {pipeline_mode = #tpu.pipeline_mode<synchronous>, transform_indices = @transform_3, window_bounds = array<i64: 224, 7>}, {pipeline_mode = #tpu.pipeline_mode<synchronous>, transform_indices = @transform_4, window_bounds = array<i64: 7, 21, 512>}, {transform_indices = @transform_5, window_bounds = array<i64: 1, 1, 1>}]} {
    %c0_i32 = arith.constant 0 : i32
    %0 = arith.cmpi eq, %arg1, %c0_i32 : i32
    %1 = arith.extui %0 : i1 to i32
    %c0_i32_0 = arith.constant 0 : i32
    %2 = arith.cmpi ne, %1, %c0_i32_0 : i32
    scf.if %2 {
      %cst_19 = arith.constant 0.000000e+00 : f32
      %22 = vector.broadcast %cst_19 : f32 to vector<21x224xf32>
      %c0_20 = arith.constant 0 : index
      %c0_21 = arith.constant 0 : index
      %23 = vector.load %arg8[%c0_20, %c0_21] : memref<21x224xf32, #tpu.memory_space<vmem>>, vector<21x224xf32>
      tpu.vector_store %arg8[%c0_20, %c0_21], %22 {strides = array<i32>} : memref<21x224xf32, #tpu.memory_space<vmem>>, vector<21x224xf32>,
      %cst_22 = arith.constant 0.000000e+00 : f32
      %24 = vector.broadcast %cst_22 : f32 to vector<21x224xf32>
      %c0_23 = arith.constant 0 : index
      %c0_24 = arith.constant 0 : index
      %25 = vector.load %arg9[%c0_23, %c0_24] : memref<21x224xf32, #tpu.memory_space<vmem>>, vector<21x224xf32>
      tpu.vector_store %arg9[%c0_23, %c0_24], %24 {strides = array<i32>} : memref<21x224xf32, #tpu.memory_space<vmem>>, vector<21x224xf32>,
    } else {
    }
    %c0 = arith.constant 0 : index
    %c0_1 = arith.constant 0 : index
    %c0_2 = arith.constant 0 : index
    %3 = vector.load %arg4[%c0, %c0_1, %c0_2] : memref<1x21x168xbf16, #tpu.memory_space<vmem>>, vector<1x21x168xbf16>
    %4 = vector.shape_cast %3 : vector<1x21x168xbf16> to vector<21x168xbf16>
    %c0_3 = arith.constant 0 : index
    %c0_4 = arith.constant 0 : index
    %c0_5 = arith.constant 0 : index
    %5 = vector.load %arg2[%c0_3, %c0_4, %c0_5] : memref<1x168x224xf32, #tpu.memory_space<vmem>>, vector<1x168x224xf32>
    %6 = vector.shape_cast %5 : vector<1x168x224xf32> to vector<168x224xf32>
    %7 = arith.truncf %6 : vector<168x224xf32> to vector<168x224xbf16>
    %c0_6 = arith.constant 0 : index
    %c0_7 = arith.constant 0 : index
    %c0_8 = arith.constant 0 : index
    %8 = vector.load %arg3[%c0_6, %c0_7, %c0_8] : memref<1x168x224xf32, #tpu.memory_space<vmem>>, vector<1x168x224xf32>
    %9 = vector.shape_cast %8 : vector<1x168x224xf32> to vector<168x224xf32>
    %10 = arith.truncf %9 : vector<168x224xf32> to vector<168x224xbf16>
    %c0_9 = arith.constant 0 : index
    %c0_10 = arith.constant 0 : index
    %11 = vector.load %arg8[%c0_9, %c0_10] : memref<21x224xf32, #tpu.memory_space<vmem>>, vector<21x224xf32>
    %cst = arith.constant dense<0.000000e+00> : vector<21x224xf32>
    %12 = tpu.matmul %4, %7, %cst {dimension_numbers = #tpu.dot_dimension_numbers<[1], [0], [0], [1], [0, 0, 1, 1], [], []>} : vector<21x168xbf16>, vector<168x224xbf16>, vector<21x224xf32> -> vector<21x224xf32>
    %13 = arith.addf %11, %12 : vector<21x224xf32>
    %c0_11 = arith.constant 0 : index
    %c0_12 = arith.constant 0 : index
    %14 = vector.load %arg8[%c0_11, %c0_12] : memref<21x224xf32, #tpu.memory_space<vmem>>, vector<21x224xf32>
    tpu.vector_store %arg8[%c0_11, %c0_12], %13 {strides = array<i32>} : memref<21x224xf32, #tpu.memory_space<vmem>>, vector<21x224xf32>,
    %c0_13 = arith.constant 0 : index
    %c0_14 = arith.constant 0 : index
    %15 = vector.load %arg9[%c0_13, %c0_14] : memref<21x224xf32, #tpu.memory_space<vmem>>, vector<21x224xf32>
    %cst_15 = arith.constant dense<0.000000e+00> : vector<21x224xf32>
    %16 = tpu.matmul %4, %10, %cst_15 {dimension_numbers = #tpu.dot_dimension_numbers<[1], [0], [0], [1], [0, 0, 1, 1], [], []>} : vector<21x168xbf16>, vector<168x224xbf16>, vector<21x224xf32> -> vector<21x224xf32>
    %17 = arith.addf %15, %16 : vector<21x224xf32>
    %c0_16 = arith.constant 0 : index
    %c0_17 = arith.constant 0 : index
    %18 = vector.load %arg9[%c0_16, %c0_17] : memref<21x224xf32, #tpu.memory_space<vmem>>, vector<21x224xf32>
    tpu.vector_store %arg9[%c0_16, %c0_17], %17 {strides = array<i32>} : memref<21x224xf32, #tpu.memory_space<vmem>>, vector<21x224xf32>,
    %c3_i32 = arith.constant 3 : i32
    %19 = arith.cmpi eq, %arg1, %c3_i32 : i32
    %20 = arith.extui %19 : i1 to i32
    %c0_i32_18 = arith.constant 0 : i32
    %21 = arith.cmpi ne, %20, %c0_i32_18 : i32
    scf.if %21 {
      %c0_19 = arith.constant 0 : index
      %c0_20 = arith.constant 0 : index
      %22 = vector.load %arg5[%c0_19, %c0_20] : memref<224x7xf32, #tpu.memory_space<vmem>>, vector<224x7xf32>
      %c0_21 = arith.constant 0 : index
      %c0_22 = arith.constant 0 : index
      %23 = vector.load %arg8[%c0_21, %c0_22] : memref<21x224xf32, #tpu.memory_space<vmem>>, vector<21x224xf32>
      %cst_23 = arith.constant dense<0.000000e+00> : vector<21x7xf32>
      %24 = tpu.matmul %23, %22, %cst_23 {dimension_numbers = #tpu.dot_dimension_numbers<[1], [0], [0], [1], [0, 0, 1, 1], [], []>} : vector<21x224xf32>, vector<224x7xf32>, vector<21x7xf32> -> vector<21x7xf32>
      %c0_24 = arith.constant 0 : index
      %c0_25 = arith.constant 0 : index
      %25 = vector.load %arg9[%c0_24, %c0_25] : memref<21x224xf32, #tpu.memory_space<vmem>>, vector<21x224xf32>
      %cst_26 = arith.constant dense<0.000000e+00> : vector<21x7xf32>
      %26 = tpu.matmul %25, %22, %cst_26 {dimension_numbers = #tpu.dot_dimension_numbers<[1], [0], [0], [1], [0, 0, 1, 1], [], []>} : vector<21x224xf32>, vector<224x7xf32>, vector<21x7xf32> -> vector<21x7xf32>
      %cst_27 = arith.constant 0.000000e+00 : f32
      %27 = vector.broadcast %cst_27 : f32 to vector<1x512xf32>
      %cst_28 = arith.constant 0.000000e+00 : f32
      %28 = vector.broadcast %cst_28 : f32 to vector<1x512xf32>
      %c0_29 = arith.constant 0 : index
      %c0_30 = arith.constant 0 : index
      %c0_31 = arith.constant 0 : index
      %29 = vector.load %arg6[%c0_29, %c0_30, %c0_31] : memref<7x21x512xf32, #tpu.memory_space<vmem>>, vector<1x21x512xf32>
      %30 = vector.shape_cast %29 : vector<1x21x512xf32> to vector<21x512xf32>
      %31 = vector.extract_strided_slice %24 {offsets = [0, 0], sizes = [21, 1], strides = [1, 1]} : vector<21x7xf32> to vector<21x1xf32>
      %32 = vector.broadcast %31 : vector<21x1xf32> to vector<21x512xf32>
      %33 = arith.mulf %32, %30 : vector<21x512xf32>
      %cst_32 = arith.constant dense<0.000000e+00> : vector<512xf32>
      %34 = vector.multi_reduction <add>, %33, %cst_32 [0] : vector<21x512xf32> to vector<512xf32>
      %35 = vector.shape_cast %34 : vector<512xf32> to vector<1x512xf32>
      %36 = arith.addf %27, %35 : vector<1x512xf32>
      %37 = vector.extract_strided_slice %26 {offsets = [0, 0], sizes = [21, 1], strides = [1, 1]} : vector<21x7xf32> to vector<21x1xf32>
      %38 = vector.broadcast %37 : vector<21x1xf32> to vector<21x512xf32>
      %39 = arith.mulf %38, %30 : vector<21x512xf32>
      %cst_33 = arith.constant dense<0.000000e+00> : vector<512xf32>
      %40 = vector.multi_reduction <add>, %39, %cst_33 [0] : vector<21x512xf32> to vector<512xf32>
      %41 = vector.shape_cast %40 : vector<512xf32> to vector<1x512xf32>
      %42 = arith.addf %28, %41 : vector<1x512xf32>
      %c1 = arith.constant 1 : index
      %c0_34 = arith.constant 0 : index
      %c0_35 = arith.constant 0 : index
      %43 = vector.load %arg6[%c1, %c0_34, %c0_35] : memref<7x21x512xf32, #tpu.memory_space<vmem>>, vector<1x21x512xf32>
      %44 = vector.shape_cast %43 : vector<1x21x512xf32> to vector<21x512xf32>
      %45 = vector.extract_strided_slice %24 {offsets = [0, 1], sizes = [21, 1], strides = [1, 1]} : vector<21x7xf32> to vector<21x1xf32>
      %46 = vector.broadcast %45 : vector<21x1xf32> to vector<21x512xf32>
      %47 = arith.mulf %46, %44 : vector<21x512xf32>
      %cst_36 = arith.constant dense<0.000000e+00> : vector<512xf32>
      %48 = vector.multi_reduction <add>, %47, %cst_36 [0] : vector<21x512xf32> to vector<512xf32>
      %49 = vector.shape_cast %48 : vector<512xf32> to vector<1x512xf32>
      %50 = arith.addf %36, %49 : vector<1x512xf32>
      %51 = vector.extract_strided_slice %26 {offsets = [0, 1], sizes = [21, 1], strides = [1, 1]} : vector<21x7xf32> to vector<21x1xf32>
      %52 = vector.broadcast %51 : vector<21x1xf32> to vector<21x512xf32>
      %53 = arith.mulf %52, %44 : vector<21x512xf32>
      %cst_37 = arith.constant dense<0.000000e+00> : vector<512xf32>
      %54 = vector.multi_reduction <add>, %53, %cst_37 [0] : vector<21x512xf32> to vector<512xf32>
      %55 = vector.shape_cast %54 : vector<512xf32> to vector<1x512xf32>
      %56 = arith.addf %42, %55 : vector<1x512xf32>
      %c2 = arith.constant 2 : index
      %c0_38 = arith.constant 0 : index
      %c0_39 = arith.constant 0 : index
      %57 = vector.load %arg6[%c2, %c0_38, %c0_39] : memref<7x21x512xf32, #tpu.memory_space<vmem>>, vector<1x21x512xf32>
      %58 = vector.shape_cast %57 : vector<1x21x512xf32> to vector<21x512xf32>
      %59 = vector.extract_strided_slice %24 {offsets = [0, 2], sizes = [21, 1], strides = [1, 1]} : vector<21x7xf32> to vector<21x1xf32>
      %60 = vector.broadcast %59 : vector<21x1xf32> to vector<21x512xf32>
      %61 = arith.mulf %60, %58 : vector<21x512xf32>
      %cst_40 = arith.constant dense<0.000000e+00> : vector<512xf32>
      %62 = vector.multi_reduction <add>, %61, %cst_40 [0] : vector<21x512xf32> to vector<512xf32>
      %63 = vector.shape_cast %62 : vector<512xf32> to vector<1x512xf32>
      %64 = arith.addf %50, %63 : vector<1x512xf32>
      %65 = vector.extract_strided_slice %26 {offsets = [0, 2], sizes = [21, 1], strides = [1, 1]} : vector<21x7xf32> to vector<21x1xf32>
      %66 = vector.broadcast %65 : vector<21x1xf32> to vector<21x512xf32>
      %67 = arith.mulf %66, %58 : vector<21x512xf32>
      %cst_41 = arith.constant dense<0.000000e+00> : vector<512xf32>
      %68 = vector.multi_reduction <add>, %67, %cst_41 [0] : vector<21x512xf32> to vector<512xf32>
      %69 = vector.shape_cast %68 : vector<512xf32> to vector<1x512xf32>
      %70 = arith.addf %56, %69 : vector<1x512xf32>
      %c3 = arith.constant 3 : index
      %c0_42 = arith.constant 0 : index
      %c0_43 = arith.constant 0 : index
      %71 = vector.load %arg6[%c3, %c0_42, %c0_43] : memref<7x21x512xf32, #tpu.memory_space<vmem>>, vector<1x21x512xf32>
      %72 = vector.shape_cast %71 : vector<1x21x512xf32> to vector<21x512xf32>
      %73 = vector.extract_strided_slice %24 {offsets = [0, 3], sizes = [21, 1], strides = [1, 1]} : vector<21x7xf32> to vector<21x1xf32>
      %74 = vector.broadcast %73 : vector<21x1xf32> to vector<21x512xf32>
      %75 = arith.mulf %74, %72 : vector<21x512xf32>
      %cst_44 = arith.constant dense<0.000000e+00> : vector<512xf32>
      %76 = vector.multi_reduction <add>, %75, %cst_44 [0] : vector<21x512xf32> to vector<512xf32>
      %77 = vector.shape_cast %76 : vector<512xf32> to vector<1x512xf32>
      %78 = arith.addf %64, %77 : vector<1x512xf32>
      %79 = vector.extract_strided_slice %26 {offsets = [0, 3], sizes = [21, 1], strides = [1, 1]} : vector<21x7xf32> to vector<21x1xf32>
      %80 = vector.broadcast %79 : vector<21x1xf32> to vector<21x512xf32>
      %81 = arith.mulf %80, %72 : vector<21x512xf32>
      %cst_45 = arith.constant dense<0.000000e+00> : vector<512xf32>
      %82 = vector.multi_reduction <add>, %81, %cst_45 [0] : vector<21x512xf32> to vector<512xf32>
      %83 = vector.shape_cast %82 : vector<512xf32> to vector<1x512xf32>
      %84 = arith.addf %70, %83 : vector<1x512xf32>
      %c4 = arith.constant 4 : index
      %c0_46 = arith.constant 0 : index
      %c0_47 = arith.constant 0 : index
      %85 = vector.load %arg6[%c4, %c0_46, %c0_47] : memref<7x21x512xf32, #tpu.memory_space<vmem>>, vector<1x21x512xf32>
      %86 = vector.shape_cast %85 : vector<1x21x512xf32> to vector<21x512xf32>
      %87 = vector.extract_strided_slice %24 {offsets = [0, 4], sizes = [21, 1], strides = [1, 1]} : vector<21x7xf32> to vector<21x1xf32>
      %88 = vector.broadcast %87 : vector<21x1xf32> to vector<21x512xf32>
      %89 = arith.mulf %88, %86 : vector<21x512xf32>
      %cst_48 = arith.constant dense<0.000000e+00> : vector<512xf32>
      %90 = vector.multi_reduction <add>, %89, %cst_48 [0] : vector<21x512xf32> to vector<512xf32>
      %91 = vector.shape_cast %90 : vector<512xf32> to vector<1x512xf32>
      %92 = arith.addf %78, %91 : vector<1x512xf32>
      %93 = vector.extract_strided_slice %26 {offsets = [0, 4], sizes = [21, 1], strides = [1, 1]} : vector<21x7xf32> to vector<21x1xf32>
      %94 = vector.broadcast %93 : vector<21x1xf32> to vector<21x512xf32>
      %95 = arith.mulf %94, %86 : vector<21x512xf32>
      %cst_49 = arith.constant dense<0.000000e+00> : vector<512xf32>
      %96 = vector.multi_reduction <add>, %95, %cst_49 [0] : vector<21x512xf32> to vector<512xf32>
      %97 = vector.shape_cast %96 : vector<512xf32> to vector<1x512xf32>
      %98 = arith.addf %84, %97 : vector<1x512xf32>
      %c5 = arith.constant 5 : index
      %c0_50 = arith.constant 0 : index
      %c0_51 = arith.constant 0 : index
      %99 = vector.load %arg6[%c5, %c0_50, %c0_51] : memref<7x21x512xf32, #tpu.memory_space<vmem>>, vector<1x21x512xf32>
      %100 = vector.shape_cast %99 : vector<1x21x512xf32> to vector<21x512xf32>
      %101 = vector.extract_strided_slice %24 {offsets = [0, 5], sizes = [21, 1], strides = [1, 1]} : vector<21x7xf32> to vector<21x1xf32>
      %102 = vector.broadcast %101 : vector<21x1xf32> to vector<21x512xf32>
      %103 = arith.mulf %102, %100 : vector<21x512xf32>
      %cst_52 = arith.constant dense<0.000000e+00> : vector<512xf32>
      %104 = vector.multi_reduction <add>, %103, %cst_52 [0] : vector<21x512xf32> to vector<512xf32>
      %105 = vector.shape_cast %104 : vector<512xf32> to vector<1x512xf32>
      %106 = arith.addf %92, %105 : vector<1x512xf32>
      %107 = vector.extract_strided_slice %26 {offsets = [0, 5], sizes = [21, 1], strides = [1, 1]} : vector<21x7xf32> to vector<21x1xf32>
      %108 = vector.broadcast %107 : vector<21x1xf32> to vector<21x512xf32>
      %109 = arith.mulf %108, %100 : vector<21x512xf32>
      %cst_53 = arith.constant dense<0.000000e+00> : vector<512xf32>
      %110 = vector.multi_reduction <add>, %109, %cst_53 [0] : vector<21x512xf32> to vector<512xf32>
      %111 = vector.shape_cast %110 : vector<512xf32> to vector<1x512xf32>
      %112 = arith.addf %98, %111 : vector<1x512xf32>
      %c6 = arith.constant 6 : index
      %c0_54 = arith.constant 0 : index
      %c0_55 = arith.constant 0 : index
      %113 = vector.load %arg6[%c6, %c0_54, %c0_55] : memref<7x21x512xf32, #tpu.memory_space<vmem>>, vector<1x21x512xf32>
      %114 = vector.shape_cast %113 : vector<1x21x512xf32> to vector<21x512xf32>
      %115 = vector.extract_strided_slice %24 {offsets = [0, 6], sizes = [21, 1], strides = [1, 1]} : vector<21x7xf32> to vector<21x1xf32>
      %116 = vector.broadcast %115 : vector<21x1xf32> to vector<21x512xf32>
      %117 = arith.mulf %116, %114 : vector<21x512xf32>
      %cst_56 = arith.constant dense<0.000000e+00> : vector<512xf32>
      %118 = vector.multi_reduction <add>, %117, %cst_56 [0] : vector<21x512xf32> to vector<512xf32>
      %119 = vector.shape_cast %118 : vector<512xf32> to vector<1x512xf32>
      %120 = arith.addf %106, %119 : vector<1x512xf32>
      %121 = vector.extract_strided_slice %26 {offsets = [0, 6], sizes = [21, 1], strides = [1, 1]} : vector<21x7xf32> to vector<21x1xf32>
      %122 = vector.broadcast %121 : vector<21x1xf32> to vector<21x512xf32>
      %123 = arith.mulf %122, %114 : vector<21x512xf32>
      %cst_57 = arith.constant dense<0.000000e+00> : vector<512xf32>
      %124 = vector.multi_reduction <add>, %123, %cst_57 [0] : vector<21x512xf32> to vector<512xf32>
      %125 = vector.shape_cast %124 : vector<512xf32> to vector<1x512xf32>
      %126 = arith.addf %112, %125 : vector<1x512xf32>
      %127 = arith.mulf %120, %120 : vector<1x512xf32>
      %cst_58 = arith.constant dense<0.000000e+00> : vector<1xf32>
      %128 = vector.multi_reduction <add>, %127, %cst_58 [1] : vector<1x512xf32> to vector<1xf32>
      %129 = vector.shape_cast %128 : vector<1xf32> to vector<1x1xf32>
      %130 = math.rsqrt %129 : vector<1x1xf32>
      %131 = vector.broadcast %130 : vector<1x1xf32> to vector<1x512xf32>
      %132 = arith.mulf %120, %131 : vector<1x512xf32>
      %133 = arith.mulf %126, %126 : vector<1x512xf32>
      %cst_59 = arith.constant dense<0.000000e+00> : vector<1xf32>
      %134 = vector.multi_reduction <add>, %133, %cst_59 [1] : vector<1x512xf32> to vector<1xf32>
      %135 = vector.shape_cast %134 : vector<1xf32> to vector<1x1xf32>
      %136 = math.rsqrt %135 : vector<1x1xf32>
      %137 = vector.broadcast %136 : vector<1x1xf32> to vector<1x512xf32>
      %138 = arith.mulf %126, %137 : vector<1x512xf32>
      %139 = arith.mulf %132, %138 : vector<1x512xf32>
      %cst_60 = arith.constant dense<0.000000e+00> : vector<1xf32>
      %140 = vector.multi_reduction <add>, %139, %cst_60 [1] : vector<1x512xf32> to vector<1xf32>
      %141 = vector.shape_cast %140 : vector<1xf32> to vector<1x1xf32>
      %cst_61 = arith.constant 1.000000e+00 : f32
      %142 = vector.broadcast %cst_61 : f32 to vector<1x1xf32>
      %143 = arith.subf %142, %141 : vector<1x1xf32>
      %c0_62 = arith.constant 0 : index
      %c0_63 = arith.constant 0 : index
      %c0_64 = arith.constant 0 : index
      %144 = vector.load %arg7[%c0_62, %c0_63, %c0_64] : memref<1x1x1xf32, #tpu.memory_space<vmem>>, vector<1x1x1xf32>
      %145 = vector.shape_cast %144 : vector<1x1x1xf32> to vector<1x1xf32>
      %146 = vector.shape_cast %143 : vector<1x1xf32> to vector<1x1x1xf32>
      tpu.vector_store %arg7[%c0_62, %c0_63, %c0_64], %146 {strides = array<i32>} : memref<1x1x1xf32, #tpu.memory_space<vmem>>, vector<1x1x1xf32>,
    } else {
    }
    return
  }
  func.func @transform_0(%arg0: i32, %arg1: i32) -> (i32, i32, i32) {
    %c0_i32 = arith.constant 0 : i32
    %c0_i32_0 = arith.constant 0 : i32
    return %arg0, %arg1, %c0_i32 : i32, i32, i32
  }
  func.func @transform_1(%arg0: i32, %arg1: i32) -> (i32, i32, i32) {
    %c0_i32 = arith.constant 0 : i32
    %c0_i32_0 = arith.constant 0 : i32
    return %arg0, %arg1, %c0_i32 : i32, i32, i32
  }
  func.func @transform_2(%arg0: i32, %arg1: i32) -> (i32, i32, i32) {
    %c0_i32 = arith.constant 0 : i32
    %c0_i32_0 = arith.constant 0 : i32
    %c0_i32_1 = arith.constant 0 : i32
    return %arg1, %c0_i32, %c0_i32_0 : i32, i32, i32
  }
  func.func @transform_3(%arg0: i32, %arg1: i32) -> (i32, i32) {
    %c0_i32 = arith.constant 0 : i32
    %c0_i32_0 = arith.constant 0 : i32
    %c0_i32_1 = arith.constant 0 : i32
    return %c0_i32, %c0_i32_0 : i32, i32
  }
  func.func @transform_4(%arg0: i32, %arg1: i32) -> (i32, i32, i32) {
    %c0_i32 = arith.constant 0 : i32
    %c0_i32_0 = arith.constant 0 : i32
    %c0_i32_1 = arith.constant 0 : i32
    %c0_i32_2 = arith.constant 0 : i32
    return %c0_i32, %c0_i32_0, %c0_i32_1 : i32, i32, i32
  }
  func.func @transform_5(%arg0: i32, %arg1: i32) -> (i32, i32, i32) {
    %c0_i32 = arith.constant 0 : i32
    %c0_i32_0 = arith.constant 0 : i32
    %c0_i32_1 = arith.constant 0 : i32
    return %arg0, %c0_i32, %c0_i32_0 : i32, i32, i32
  }
}

</mosaic_0001>

<bundles_post_ra>
// kernel: id_loss.1
= control target key start
LH: loop header
LB: loop body
LE: loop exit
PB: predicated region body
PF: predicated region fallthrough
CT: control target
= control target key end

     0   :  { %s4157_s0 = inlined_call_operand.hbm [shape: f32[2,672,224], index: 0, kind: input, shape index: {}]   ;;  %s4158_s1 = inlined_call_operand.hbm [shape: f32[2,672,224], index: 1, kind: input, shape index: {}]   ;;  %s4159_s2 = inlined_call_operand.vmem [shape: bf16[4,21,168], index: 2, kind: input, shape index: {}]   ;;  %s4160_s3 = inlined_call_operand.vmem [shape: f32[224,7], index: 3, kind: input, shape index: {}]   ;;  %s4161_s4 = inlined_call_operand.vmem [shape: f32[7,21,512], index: 4, kind: input, shape index: {}]   ;;  %s4162_s5 = inlined_call_operand.vmem [shape: f32[2,1,1], index: 5, kind: output, shape index: {}]  }
   0x1   :  { %4182 = sst [smem:[#allocation57_spill]] %s4157_s0 }
   0x2   :  { %10 = vsyncpa [#allocation5], 0 }
   0x3   :  { %12 = vsyncpa [#allocation5 + $0x1], 0 }
   0x4   :  { %13 = vsyncpa [#allocation7], 0 }
   0x5   :  { %15 = vsyncpa [#allocation7 + $0x1], 0  ;;  %s2520_s18 = smov 0   ;;  %s2522_s19 = smov 0  }
   0x6   :  { %s2524_s20 = smov 0   ;;  %s2526_s21 = smov 0  }
   0x7   :  { %s2528_s22 = smov 0   ;;  %s2530_s23 = smov 0  }
   0x8   :  { %s2532_s24 = smov 0   ;;  %s2534_s25 = smov 0  }
   0x9 LB: > { %s2016_s26 = sadd.s32 4294967295, %s2475_s25   ;;  %s30_s27 = sadd.s32 1, %s2467_s23  ;;  %s2475_s25 = sphi %s2534_s25, %s21_s25   ;;  %s2471_s24 = sphi %s2532_s24, %s4357_s24   ;;  %s2467_s23 = sphi %s2530_s23, %s4356_s23   ;;  %s2463_s22 = sphi %s2528_s22, %s4355_s22   ;;  %s2459_s21 = sphi %s2526_s21, %s4354_s21   ;;  %s2455_s20 = sphi %s2524_s20, %s4353_s20   ;;  %s2451_s19 = sphi %s2522_s19, %s4352_s19   ;;  %s2447_s18 = sphi %s2520_s18, %s4351_s18  }
   0xa   : > { %p31_p0 = scmp.ge.s32.totalorder %s30_s27, 4  ;;  %s33_s28 = sadd.s32 1, %s2471_s24 }
   0xb   : > { %s42_s29 = sadd.s32 1, %s2455_s20  ;;  %p49_p1 = scmp.ne.s32.totalorder %s2455_s20, %s2451_s19 }
   0xc   : > { %s4359_s27 = smov (%p31_p0, %s30_s27), 0  ;;  %s4361_s28 = smov (!%p31_p0, %s33_s28), %s2471_s24 }
   0xd   : > { %s38_s30 = ssub.s32 %s2467_s23, %s4359_s27  ;;  %p50_p2 = scmp.eq.s32.totalorder %s2475_s25, 0 }
   0xe   : > { %p35_p3 = scmp.ge.s32.totalorder %s4361_s28, 2  ;;  %p55_p4 = scmp.ne.s32.totalorder %s2451_s19, %s2447_s18 }
   0xf   : > { %p51_p5 = por %p50_p2, %p49_p1  ;;  %p56_p6 = scmp.eq.s32.totalorder %s2016_s26, 0 }
  0x10   : > { %s4363_s28 = smov (%p35_p3, %s4361_s28), 0  ;;  %p2221_p8 = scmp.lt.s32.totalorder %s2475_s25, 8 }
  0x11   : > { %4183 = sst [smem:[#allocation10_spill]] %s4363_s28  ;;  %p2573_p7 = por %p56_p6, %p55_p4 }
  0x12   : > { %s37_s7 = ssub.s32 %s2471_s24, %s4363_s28  ;;  %s2581_s9 = sand.u32 1, %s2455_s20  }
  0x13   : > { %s4184_s6 = scalar_select %p2573_p7, 1, 0 }
  0x14   : > { %s39_s8 = sor.u32 %s38_s30, %s37_s7  ;;  %s4163_s10 = smul.u32 336, %s2581_s9 }
  0x15   : > { %p40_p9 = scmp.eq.s32.totalorder %s39_s8, 0  ;;  %p2584_p10 = pnand %p2221_p8, %p51_p5 }
  0x16   : > { %s2118_s13 = smul.u32 42, %s2467_s23  ;;  %s211_s15 = scalar_lea.vmem [#allocation4], %s4163_s10 }
  0x17   : > { %s2589_s12 = scalar_select %p40_p9, %s2455_s20, %s42_s29  }
  0x18   : > { %s2205_s14 = smul.u32 168, %s2471_s24  ;;  %s221_s16 = sshll.u32 %s211_s15, 4  ;;  %s2595_s16 = int_to_ptr.vmem [resolvable:$true] %s221_s16 }
  0x19   : > { %s4186_s0 = sld [smem:[#allocation57_spill]]  ;;  %s208_s29 = scalar_lea.sflag [#allocation5], %s2581_s9 }
  0x1a   : > { %s2597_s17 = sadd.s32 %s2205_s14, %s2118_s13  ;;  %p2347_p13 = pneg %p2584_p10 }
  0x1b   : > { %s2021_s18 = sshll.u32 %s2597_s17, 7 }
  0x1f   : > { %s2605_s7 = scalar_lea.hbm %s4186_s0, %s2021_s18  ;;  %s2350_s15 = scalar_lea.hbm %s4186_s0, 43008 }
  0x20   : > { %s2345_s8 = scalar_lea.hbm %s2605_s7, 5376  ;;  %p2351_p2 = scmp.lt.u32.totalorder %s2605_s7, %s4186_s0 }
  0x21   : > { %p2346_p12 = scmp.ne.s32.totalorder %s2605_s7, %s2345_s8  ;;  %p2352_p3 = scmp.lt.u32.totalorder %s2350_s15, %s2345_s8 }
  0x22   : > { %p2354_p5 = scmp.lt.u32.totalorder %s2345_s8, %s2605_s7 }
  0x23   : > { %p2348_p0 = pnand %p2347_p13, %p2346_p12  ;;  %p2353_p4 = por %p2352_p3, %p2351_p2 }
  0x25   : > { %p2349_p1 = pneg %p2348_p0  ;;  %p2355_p6 = por %p2354_p5, %p2353_p4 }
  0x27   : > { %p2356_p8 = pnand %p2355_p6, %p2349_p1 }
  0x29   : > { %2359 = shalt.err (!%p2356_p8)
}
  0x2a   : > { %s2360_s10 = scalar_lea.vmem %s2595_s16, 5376  ;;  %s2477_s13 = smov [#allocation4]  }
  0x2b   : > { %p2361_p9 = scmp.ne.s32.totalorder %s2595_s16, %s2360_s10  ;;  %s2365_s14 = sshll.u32 %s2477_s13, 4  ;;  %s2366_s14 = int_to_ptr.vmem [resolvable:$false] %s2365_s14 }
  0x2c   : > { %s2367_s26 = scalar_lea.vmem %s2366_s14, 10752  ;;  %p2368_p11 = scmp.lt.s32.totalorder %s2595_s16, %s2366_s14 }
  0x2d   : > { %p2363_p12 = pnand %p2361_p9, %p2347_p13  ;;  %p2369_p2 = scmp.lt.s32.totalorder %s2367_s26, %s2360_s10 }
  0x2f   : > { %p2364_p0 = pneg %p2363_p12  ;;  %p2370_p3 = por %p2369_p2, %p2368_p11 }
  0x31   : > { %p2371_p4 = pnand %p2370_p3, %p2364_p0 }
  0x33   : > { %2374 = shalt.err (!%p2371_p4)
}
  0x34   : > { %s2478_s8 = smov 256   ;;  %s2479_s15 = smov 16  }
  0x35   : > { %2217 = dma.hbm_to_vmem [thread:$0]  (!%p2584_p10), %s2605_s7, 5376, %s2595_s16, %s208_s29, %s2478_s8, %s2478_s8, %s2479_s15  }
  0x36   : > { %p261_p11 = scmp.lt.s32.totalorder %s2475_s25, 9  ;;  %s2645_s13 = scalar_lea.hbm %s4158_s1, %s2021_s18 }
  0x37   : > { %p4187_p1 = scmp.ge.s32.totalorder %s2475_s25, 1  ;;  %s4189_s26 = smul.u32 336, %s2581_s9 }
  0x38   : > { %s232_s16 = scalar_lea.sflag [#allocation7], %s2581_s9  ;;  %s2375_s17 = scalar_lea.hbm %s2645_s13, 5376 }
  0x39   : > { %p2649_p5 = pnand %p4187_p1, %p261_p11  ;;  %s235_s0 = scalar_lea.vmem [#allocation6], %s4189_s26 }
  0x3a   : > { %s245_s28 = sshll.u32 %s235_s0, 4  ;;  %p2376_p6 = scmp.ne.s32.totalorder %s2645_s13, %s2375_s17  ;;  %s2655_s28 = int_to_ptr.vmem [resolvable:$true] %s245_s28 }
  0x3b   : > { %s2380_s29 = scalar_lea.hbm %s4158_s1, 43008  ;;  %p2381_p12 = scmp.lt.u32.totalorder %s2645_s13, %s4158_s1 }
  0x3c   : > { %p2378_p8 = pnand %p2376_p6, %p2347_p13  ;;  %p2382_p0 = scmp.lt.u32.totalorder %s2380_s29, %s2375_s17 }
  0x3d   : > { %p2384_p3 = scmp.lt.u32.totalorder %s2375_s17, %s2645_s13 }
  0x3e   : > { %p2379_p9 = pneg %p2378_p8  ;;  %p2383_p2 = por %p2382_p0, %p2381_p12 }
  0x40   : > { %p2385_p4 = por %p2384_p3, %p2383_p2 }
  0x42   : > { %p2386_p11 = pnand %p2385_p4, %p2379_p9 }
  0x44   : > { %2389 = shalt.err (!%p2386_p11)
}
  0x45   : > { %s2390_s0 = scalar_lea.vmem %s2655_s28, 5376  ;;  %s2480_s26 = smov [#allocation6]  }
  0x46   : > { %p2391_p1 = scmp.ne.s32.totalorder %s2655_s28, %s2390_s0  ;;  %s2395_s18 = sshll.u32 %s2480_s26, 4  ;;  %s2396_s18 = int_to_ptr.vmem [resolvable:$false] %s2395_s18 }
  0x47   : > { %s2397_s7 = scalar_lea.vmem %s2396_s18, 10752  ;;  %p2398_p7 = scmp.lt.s32.totalorder %s2655_s28, %s2396_s18 }
  0x48   : > { %p2393_p6 = pnand %p2391_p1, %p2347_p13  ;;  %p2399_p12 = scmp.lt.s32.totalorder %s2397_s7, %s2390_s0 }
  0x4a   : > { %p2394_p8 = pneg %p2393_p6  ;;  %p2400_p0 = por %p2399_p12, %p2398_p7 }
  0x4c   : > { %p2401_p2 = pnand %p2400_p0, %p2394_p8 }
  0x4e   : > { %2404 = shalt.err (!%p2401_p2)
}
  0x4f   : > { %2220 = dma.hbm_to_vmem [thread:$0]  (!%p2584_p10), %s2645_s13, 5376, %s2655_s28, %s232_s16, %s2478_s8, %s2478_s8, %s2479_s15  }
  0x50   : > { %265 = sbr.rel (%p2649_p5) target bundleno = 1297 (0x511), region = 40  ;;  %s267_s17 = sand.u32 (!%p2649_p5), 1, %s2451_s19  }
  0x51   : > { %s2208_s29 = smul.u32 (!%p2649_p5), 336, %s267_s17  ;;  %s268_s10 = scalar_lea.sflag (!%p2649_p5), [#allocation5], %s267_s17 }
  0x52   : > { %p4190_p7 = scmp.ne.s32.totalorder (!%p2649_p5), %s4184_s6, 0 }
  0x53   : > { %s2689_s30 = scalar_lea.vmem (!%p2649_p5), [#allocation4], %s2208_s29 }
  0x57   : > { %2438 = dma.done.wait (%p4190_p7), %s268_s10, 5376  }
  0x58   : > { %2440 = vsyncadd (%p4190_p7), %s268_s10, 4294961920  ;;  %s277_s9 = scalar_lea.sflag [#allocation7], %s267_s17  ;;  %s2695_s11 = scalar_lea.vmem [#allocation6], %s2208_s29 }
  0x59   : > { %2442 = dma.done.wait (%p4190_p7), %s277_s9, 5376  }
  0x5a   : > { %2444 = vsyncadd (%p4190_p7), %s277_s9, 4294961920  ;;  %p317_p10 = scmp.lt.s32.totalorder %s2459_s21, 3  ;;  %p322_p13 = scmp.lt.s32.totalorder %s2463_s22, 1 }
  0x5b   : > { %p2026_p5 = scmp.ne.s32.totalorder %s2459_s21, 0 }
  0x5c   : > { %s318_s28 = scalar_select %p317_p10, %s2459_s21, 3 }
  0x5d   : > { %s4365_s22 = smov (!%p322_p13, %s2463_s22), 1  ;;  %329 = sbr.rel (%p2026_p5) target bundleno = 101 (0x65), region = 52 }
  0x5e   : > { %s2209_s8 = smul.u32 24, %s318_s28  ;;  %s324_s14 = scalar_lea.vmem %s4162_s5, %s4365_s22  ;;  %vm331_vm0 = vcmask (!%p2026_p5), 785408   ;;  %vm336_vm1 = vcmask (!%p2026_p5), 782336   ;;  %v2481_v0 = vmov (!%p2026_p5), 0.0  }
  0x5f   : > { %330 = vst [vmem:[#allocation2] sm:$0xff] (!%p2026_p5), %v2481_v0  ;;  %333 = vst [vmem:[#allocation2 + $0x10] sm:$0xff] (!%p2026_p5), %v2481_v0 }
  0x60   : > { %s2714_s6 = scalar_lea.vmem %s4159_s2, %s2209_s8  ;;  %335 = vst [vmem:[#allocation2 + $0x20] sm:$0x1f] (!%p2026_p5), %v2481_v0  ;;  %338 = vst [vmem:[#allocation3] sm:$0xff] (!%p2026_p5), %v2481_v0 }
  0x61   : > { %340 = vst [vmem:[#allocation3 + $0x10] sm:$0xff] (!%p2026_p5), %v2481_v0  ;;  %342 = vst [vmem:[#allocation3 + $0x20] sm:$0x1f] (!%p2026_p5), %v2481_v0 }
  0x62   : > { %332 = vst.msk [vmem:[#allocation2 + $0x8] sm:$0xff] (!%p2026_p5), %vm331_vm0, %v2481_v0  ;;  %334 = vst.msk [vmem:[#allocation2 + $0x18] sm:$0xff] (!%p2026_p5), %vm331_vm0, %v2481_v0 }
  0x63   : > { %339 = vst.msk [vmem:[#allocation3 + $0x8] sm:$0xff] (!%p2026_p5), %vm331_vm0, %v2481_v0  ;;  %341 = vst.msk [vmem:[#allocation3 + $0x18] sm:$0xff] (!%p2026_p5), %vm331_vm0, %v2481_v0 }
  0x64   : > { %337 = vst.msk [vmem:[#allocation2 + $0x28] sm:$0x1f] %vm336_vm1, %v2481_v0  ;;  %343 = vst.msk [vmem:[#allocation3 + $0x28] sm:$0x1f] %vm336_vm1, %v2481_v0 }
  0x65 PF: > { %v348_v1 = vld [vmem:[%s2689_s30 + $0x8] sm:$0xff]  ;;  %v350_v2 = vld [vmem:[%s2689_s30 + $0x18] sm:$0xff]  ;;  %v347_v6 = vld [vmem:[%s2689_s30] sm:$0xff]  ;;  %vm496_vm2 = vcmask 326656   ;;  %vm503_vm3 = vcmask 1043456   ;;  %vm568_vm4 = vcmask 785408  }
  0x66   : > { %v412_v3 = vld [vmem:[%s2695_s11 + $0x8] sm:$0xff]  ;;  %v390_v4 = vpack.c.bf16 %v350_v2, %v348_v1  ;;  %v414_v5 = vld [vmem:[%s2695_s11 + $0x18] sm:$0xff]  ;;  %v349_v7 = vld [vmem:[%s2689_s30 + $0x10] sm:$0xff]  ;;  %vm573_vm5 = vcmask 782336   ;;  %p2037_p9 = scmp.ne.s32.totalorder %s2459_s21, 3 }
  0x67   : > { %v454_v8 = vpack.c.bf16 %v414_v5, %v412_v3  ;;  %v389_v9 = vpack.c.bf16 %v349_v7, %v347_v6  ;;  %v411_v10 = vld [vmem:[%s2695_s11] sm:$0xff]  ;;  %v413_v11 = vld [vmem:[%s2695_s11 + $0x10] sm:$0xff]  ;;  %v352_v12 = vld [vmem:[%s2689_s30 + $0x28] sm:$0xff] }
  0x68   : > { %510 = vmatprep.subr.bf16.mxu0 %v390_v4  ;;  %v453_v13 = vpack.c.bf16 %v413_v11, %v411_v10  ;;  %v354_v14 = vld [vmem:[%s2689_s30 + $0x38] sm:$0xff]  ;;  %v416_v15 = vld [vmem:[%s2695_s11 + $0x28] sm:$0xff]  ;;  %v351_v19 = vld [vmem:[%s2689_s30 + $0x20] sm:$0xff] }
  0x69   : > { %v418_v16 = vld [vmem:[%s2695_s11 + $0x38] sm:$0xff]  ;;  %587 = vmatprep.subr.bf16.mxu1 %v454_v8  ;;  %511 = vmatpush1.bf16.msra.mxu0 %v389_v9  ;;  %v392_v17 = vpack.c.bf16 %v354_v14, %v352_v12  ;;  %v353_v20 = vld [vmem:[%s2689_s30 + $0x30] sm:$0xff]  ;;  %v415_v21 = vld [vmem:[%s2695_s11 + $0x20] sm:$0xff] }
  0x6a   : > { %v456_v18 = vpack.c.bf16 %v418_v16, %v416_v15  ;;  %588 = vmatpush1.bf16.msra.mxu1 %v453_v13  ;;  %v391_v22 = vpack.c.bf16 %v353_v20, %v351_v19  ;;  %v417_v23 = vld [vmem:[%s2695_s11 + $0x30] sm:$0xff]  ;;  %v356_v24 = vld [vmem:[%s2689_s30 + $0x48] sm:$0xff]  ;;  %v358_v25 = vld [vmem:[%s2689_s30 + $0x58] sm:$0xff] }
  0x6b   : > { %512 = vmatprep.subr.bf16.mxu0 %v392_v17  ;;  %v455_v26 = vpack.c.bf16 %v417_v23, %v415_v21  ;;  %v394_v27 = vpack.c.bf16 %v358_v25, %v356_v24  ;;  %v420_v28 = vld [vmem:[%s2695_s11 + $0x48] sm:$0xff]  ;;  %v422_v29 = vld [vmem:[%s2695_s11 + $0x58] sm:$0xff]  ;;  %v355_v30 = vld [vmem:[%s2689_s30 + $0x40] sm:$0xff] }
  0x6c   : > { %589 = vmatprep.subr.bf16.mxu1 %v456_v18  ;;  %v458_v31 = vpack.c.bf16 %v422_v29, %v420_v28  ;;  %v357_v32 = vld [vmem:[%s2689_s30 + $0x50] sm:$0xff]  ;;  %v419_v33 = vld [vmem:[%s2695_s11 + $0x40] sm:$0xff]  ;;  %v360_v36 = vld [vmem:[%s2689_s30 + $0x68] sm:$0xff] }
  0x6d   : > { %v421_v34 = vld [vmem:[%s2695_s11 + $0x50] sm:$0xff]  ;;  %513 = vmatpush1.bf16.msra.mxu0 %v391_v22  ;;  %v393_v35 = vpack.c.bf16 %v357_v32, %v355_v30  ;;  %v362_v37 = vld [vmem:[%s2689_s30 + $0x78] sm:$0xff]  ;;  %v424_v38 = vld [vmem:[%s2695_s11 + $0x68] sm:$0xff] }
  0x6e   : > { %590 = vmatpush1.bf16.msra.mxu1 %v455_v26  ;;  %514 = vmatprep.subr.bf16.mxu0 %v394_v27  ;;  %v457_v39 = vpack.c.bf16 %v421_v34, %v419_v33  ;;  %v396_v40 = vpack.c.bf16 %v362_v37, %v360_v36  ;;  %v426_v41 = vld [vmem:[%s2695_s11 + $0x78] sm:$0xff]  ;;  %v359_v42 = vld [vmem:[%s2689_s30 + $0x60] sm:$0xff]  ;;  %v361_v43 = vld [vmem:[%s2689_s30 + $0x70] sm:$0xff] }
  0x6f   : > { %591 = vmatprep.subr.bf16.mxu1 %v458_v31  ;;  %v460_v44 = vpack.c.bf16 %v426_v41, %v424_v38  ;;  %v423_v45 = vld [vmem:[%s2695_s11 + $0x60] sm:$0xff]  ;;  %v425_v46 = vld [vmem:[%s2695_s11 + $0x70] sm:$0xff]  ;;  %v364_v47 = vld [vmem:[%s2689_s30 + $0x88] sm:$0xff]  ;;  %v395_v51 = vpack.c.bf16 %v361_v43, %v359_v42 }
  0x70   : > { %v366_v48 = vld [vmem:[%s2689_s30 + $0x98] sm:$0xff]  ;;  %v428_v49 = vld [vmem:[%s2695_s11 + $0x88] sm:$0xff]  ;;  %v459_v52 = vpack.c.bf16 %v425_v46, %v423_v45  ;;  %v363_v54 = vld [vmem:[%s2689_s30 + $0x80] sm:$0xff] }
  0x71   : > { %v430_v50 = vld [vmem:[%s2695_s11 + $0x98] sm:$0xff]  ;;  %515 = vmatpush1.bf16.msra.mxu0 %v393_v35  ;;  %v398_v53 = vpack.c.bf16 %v366_v48, %v364_v47  ;;  %v365_v55 = vld [vmem:[%s2689_s30 + $0x90] sm:$0xff]  ;;  %v427_v56 = vld [vmem:[%s2695_s11 + $0x80] sm:$0xff] }
  0x72   : > { %592 = vmatpush1.bf16.msra.mxu1 %v457_v39  ;;  %516 = vmatprep.subr.bf16.mxu0 %v396_v40  ;;  %v462_v57 = vpack.c.bf16 %v430_v50, %v428_v49  ;;  %v429_v58 = vld [vmem:[%s2695_s11 + $0x90] sm:$0xff]  ;;  %v368_v59 = vld [vmem:[%s2689_s30 + $0xa8] sm:$0xff]  ;;  %v370_v60 = vld [vmem:[%s2689_s30 + $0xb8] sm:$0xff]  ;;  %v397_v63 = vpack.c.bf16 %v365_v55, %v363_v54 }
  0x73   : > { %593 = vmatprep.subr.bf16.mxu1 %v460_v44  ;;  %v432_v61 = vld [vmem:[%s2695_s11 + $0xa8] sm:$0xff]  ;;  %v434_v62 = vld [vmem:[%s2695_s11 + $0xb8] sm:$0xff]  ;;  %v461_v0 = vpack.c.bf16 %v429_v58, %v427_v56  ;;  %v400_v1 = vpack.c.bf16 %v370_v60, %v368_v59  ;;  %v367_v2 = vld [vmem:[%s2689_s30 + $0xa0] sm:$0xff] }
  0x74   : > { %v369_v3 = vld [vmem:[%s2689_s30 + $0xb0] sm:$0xff]  ;;  %v431_v4 = vld [vmem:[%s2695_s11 + $0xa0] sm:$0xff]  ;;  %v464_v5 = vpack.c.bf16 %v434_v62, %v432_v61  ;;  %v372_v7 = vld [vmem:[%s2689_s30 + $0xc8] sm:$0xff] }
  0x75   : > { %517 = vmatpush1.bf16.msra.mxu0 %v395_v51  ;;  %v433_v6 = vld [vmem:[%s2695_s11 + $0xb0] sm:$0xff]  ;;  %v374_v8 = vld [vmem:[%s2689_s30 + $0xd8] sm:$0xff]  ;;  %v436_v9 = vld [vmem:[%s2695_s11 + $0xc8] sm:$0xff]  ;;  %v399_v11 = vpack.c.bf16 %v369_v3, %v367_v2 }
  0x76   : > { %594 = vmatpush1.bf16.msra.mxu1 %v459_v52  ;;  %518 = vmatprep.subr.bf16.mxu0 %v398_v53  ;;  %v438_v10 = vld [vmem:[%s2695_s11 + $0xd8] sm:$0xff]  ;;  %v463_v12 = vpack.c.bf16 %v433_v6, %v431_v4  ;;  %v402_v13 = vpack.c.bf16 %v374_v8, %v372_v7  ;;  %v371_v14 = vld [vmem:[%s2689_s30 + $0xc0] sm:$0xff]  ;;  %v373_v15 = vld [vmem:[%s2689_s30 + $0xd0] sm:$0xff] }
  0x77   : > { %595 = vmatprep.subr.bf16.mxu1 %v462_v57  ;;  %v435_v16 = vld [vmem:[%s2695_s11 + $0xc0] sm:$0xff]  ;;  %v466_v17 = vpack.c.bf16 %v438_v10, %v436_v9  ;;  %v437_v18 = vld [vmem:[%s2695_s11 + $0xd0] sm:$0xff]  ;;  %v376_v19 = vld [vmem:[%s2689_s30 + $0xe8] sm:$0xff]  ;;  %v401_v23 = vpack.c.bf16 %v373_v15, %v371_v14 }
  0x78   : > { %v378_v20 = vld [vmem:[%s2689_s30 + $0xf8] sm:$0xff]  ;;  %v440_v21 = vld [vmem:[%s2695_s11 + $0xe8] sm:$0xff]  ;;  %v465_v24 = vpack.c.bf16 %v437_v18, %v435_v16  ;;  %v375_v26 = vld [vmem:[%s2689_s30 + $0xe0] sm:$0xff] }
  0x79   : > { %519 = vmatpush1.bf16.msra.mxu0 %v397_v63  ;;  %v442_v22 = vld [vmem:[%s2695_s11 + $0xf8] sm:$0xff]  ;;  %v404_v25 = vpack.c.bf16 %v378_v20, %v376_v19  ;;  %v377_v27 = vld [vmem:[%s2689_s30 + $0xf0] sm:$0xff]  ;;  %v439_v28 = vld [vmem:[%s2695_s11 + $0xe0] sm:$0xff] }
  0x7a   : > { %596 = vmatpush1.bf16.msra.mxu1 %v461_v0  ;;  %520 = vmatprep.subr.bf16.mxu0 %v400_v1  ;;  %v468_v29 = vpack.c.bf16 %v442_v22, %v440_v21  ;;  %v441_v30 = vld [vmem:[%s2695_s11 + $0xf0] sm:$0xff]  ;;  %v380_v31 = vld [vmem:[%s2689_s30 + $0x108] sm:$0xff]  ;;  %v382_v32 = vld [vmem:[%s2689_s30 + $0x118] sm:$0xff]  ;;  %v403_v35 = vpack.c.bf16 %v377_v27, %v375_v26 }
  0x7b   : > { %597 = vmatprep.subr.bf16.mxu1 %v464_v5  ;;  %v444_v33 = vld [vmem:[%s2695_s11 + $0x108] sm:$0xff]  ;;  %v446_v34 = vld [vmem:[%s2695_s11 + $0x118] sm:$0xff]  ;;  %v379_v36 = vld [vmem:[%s2689_s30 + $0x100] sm:$0xff]  ;;  %v467_v37 = vpack.c.bf16 %v441_v30, %v439_v28  ;;  %v406_v38 = vpack.c.bf16 %v382_v32, %v380_v31 }
  0x7c   : > { %v381_v39 = vld [vmem:[%s2689_s30 + $0x110] sm:$0xff]  ;;  %v443_v40 = vld [vmem:[%s2695_s11 + $0x100] sm:$0xff]  ;;  %v470_v42 = vpack.c.bf16 %v446_v34, %v444_v33  ;;  %v384_v44 = vld [vmem:[%s2689_s30 + $0x128] sm:$0xff] }
  0x7d   : > { %521 = vmatpush1.bf16.msra.mxu0 %v399_v11  ;;  %v2299_v41 = vld [vmem:[%s2714_s6 + $0x4] ss:$8 sps:$4 sm:$0xff]   ;;  %v405_v48 = vpack.c.bf16 %v381_v39, %v379_v36  ;;  %v346_v3 = vld [vmem:[%s2714_s6 + $0x10] sm:$0x77]  ;;  %v2297_v5 = vld [vmem:[%s2714_s6] ss:$8 sps:$4 sm:$0xff]  }
  0x7e   : > { %598 = vmatpush1.bf16.msra.mxu1 %v463_v12  ;;  %522 = vmatprep.subr.bf16.mxu0 %v402_v13  ;;  %v445_v43 = vld [vmem:[%s2695_s11 + $0x110] sm:$0xff]  ;;  %v386_v45 = vld [vmem:[%s2689_s30 + $0x138] sm:$0xff]  ;;  %v448_v46 = vld [vmem:[%s2695_s11 + $0x128] sm:$0xff]  ;;  %v2030_v6 = vcombine.high %v346_v3, %v346_v3  ;;  %v2029_v7 = vcombine.low %v346_v3, %v346_v3 }
  0x7f   : > { %599 = vmatprep.subr.bf16.mxu1 %v466_v17  ;;  %v450_v47 = vld [vmem:[%s2695_s11 + $0x138] sm:$0xff]  ;;  %2032 = vmatprep.mubr.msk.bf16.mxu0 %vm496_vm2, %v2299_v41  ;;  %v469_v49 = vpack.c.bf16 %v445_v43, %v443_v40  ;;  %v408_v50 = vpack.c.bf16 %v386_v45, %v384_v44  ;;  %v383_v51 = vld [vmem:[%s2689_s30 + $0x120] sm:$0xff]  ;;  %v385_v52 = vld [vmem:[%s2689_s30 + $0x130] sm:$0xff] }
  0x80   : > { %2035 = vmatprep.mubr.msk.bf16.mxu1 %vm496_vm2, %v2299_v41  ;;  %v447_v53 = vld [vmem:[%s2695_s11 + $0x120] sm:$0xff]  ;;  %v472_v54 = vpack.c.bf16 %v450_v47, %v448_v46  ;;  %v449_v55 = vld [vmem:[%s2695_s11 + $0x130] sm:$0xff]  ;;  %v388_v56 = vld [vmem:[%s2689_s30 + $0x148] sm:$0xff]  ;;  %v407_v60 = vpack.c.bf16 %v385_v52, %v383_v51 }
  0x81   : > { %523 = vmatpush1.bf16.msra.mxu0 %v401_v23  ;;  %v387_v57 = vld [vmem:[%s2689_s30 + $0x140] sm:$0xff]  ;;  %v452_v58 = vld [vmem:[%s2695_s11 + $0x148] sm:$0xff]  ;;  %v471_v61 = vpack.c.bf16 %v449_v55, %v447_v53  ;;  %v410_v62 = vpack.c.bf16 %v388_v56, %v388_v56 }
  0x82   : > { %600 = vmatpush1.bf16.msra.mxu1 %v465_v24  ;;  %524 = vmatprep.subr.bf16.mxu0 %v404_v25  ;;  %v451_v59 = vld [vmem:[%s2695_s11 + $0x140] sm:$0xff]  ;;  %v409_v63 = vpack.c.bf16 %v387_v57, %v387_v57  ;;  %v474_v0 = vpack.c.bf16 %v452_v58, %v452_v58  ;;  %v476_v10 = vld [vmem:[#allocation2 + $0x8] sm:$0xff]  ;;  %v576_v12 = vld [vmem:[#allocation3 + $0x8] sm:$0xff] }
  0x83   : > { %601 = vmatprep.subr.bf16.mxu1 %v468_v29  ;;  %v473_v1 = vpack.c.bf16 %v451_v59, %v451_v59  ;;  %v475_v8 = vld [vmem:[#allocation2] sm:$0xff]  ;;  %v575_v9 = vld [vmem:[#allocation3] sm:$0xff]  ;;  %v478_v18 = vld [vmem:[#allocation2 + $0x18] sm:$0xff] }
  0x84   : > { %v505_v2 = vsel %vm503_vm3, %v409_v63, 0  ;;  %v477_v13 = vld [vmem:[#allocation2 + $0x10] sm:$0xff]  ;;  %v577_v17 = vld [vmem:[#allocation3 + $0x10] sm:$0xff]  ;;  %v578_v23 = vld [vmem:[#allocation3 + $0x18] sm:$0xff] }
  0x85   : > { %525 = vmatpush1.bf16.msra.mxu0 %v403_v35  ;;  %v582_v4 = vsel %vm503_vm3, %v473_v1, 0  ;;  %v479_v32 = vld [vmem:[#allocation2 + $0x20] sm:$0x1f]  ;;  %v579_v33 = vld [vmem:[#allocation3 + $0x20] sm:$0x1f] }
  0x86   : > { %602 = vmatpush1.bf16.msra.mxu1 %v467_v37  ;;  %526 = vmatprep.subr.bf16.mxu0 %v406_v38  ;;  %v480_v34 = vld [vmem:[#allocation2 + $0x28] sm:$0x1f]  ;;  %v580_v36 = vld [vmem:[#allocation3 + $0x28] sm:$0x1f] }
  0x87   : > { %603 = vmatprep.subr.bf16.mxu1 %v470_v42 }
  0x89   : > { %527 = vmatpush1.bf16.msra.mxu0 %v405_v48 }
  0x8a   : > { %604 = vmatpush1.bf16.msra.mxu1 %v469_v49  ;;  %528 = vmatprep.subr.bf16.mxu0 %v408_v50 }
  0x8b   : > { %605 = vmatprep.subr.bf16.mxu1 %v472_v54 }
  0x8d   : > { %529 = vmatpush1.bf16.msra.mxu0 %v407_v60 }
  0x8e   : > { %606 = vmatpush1.bf16.msra.mxu1 %v471_v61  ;;  %2031 = vmatprep.subr.msk.bf16.mxu0 %vm503_vm3, %v410_v62 }
  0x8f   : > { %2034 = vmatprep.subr.msk.bf16.mxu1 %vm503_vm3, %v474_v0 }
  0x91   : > { %531 = vmatpush1.bf16.msra.mxu0 %v505_v2 }
  0x92   : > { %608 = vmatpush1.bf16.msra.mxu1 %v582_v4 }
  0x94   : > { %543 = vmatmul.mubr.bf16.vlgmr.msra.gmra.mrb[0].mxu0 %v2297_v5 }
  0x95   : > { %620 = vmatmul.mubr.bf16.vlgmr.msra.gmra.mrb[0].mxu1 %v2297_v5  ;;  %2033 = vmatprep.mubr.msk.bf16.mxu0 %vm496_vm2, %v2030_v6 }
  0x96   : > { %2036 = vmatprep.mubr.msk.bf16.mxu1 %vm496_vm2, %v2030_v6 }
  0x9c   : > { %553 = vmatmul.mubr.bf16.gmra.mrb[4].mxu0 %v2029_v7 }
  0x9d   : > { %630 = vmatmul.mubr.bf16.gmra.mrb[4].mxu1 %v2029_v7 }
 0x167   : > { %v544_v11 = vpop.f32.mrb[0].mxu0 }
 0x168   : > { %v561_v14 = vadd.f32 %v544_v11, %v475_v8  ;;  %v621_v15 = vpop.f32.mrb[0].mxu1  ;;  %v546_v16 = vpop.f32.mrb[1].mxu0 }
 0x169   : > { %v638_v19 = vadd.f32 %v621_v15, %v575_v9  ;;  %v562_v20 = vadd.f32 %v546_v16, %v476_v10  ;;  %v623_v21 = vpop.f32.mrb[1].mxu1  ;;  %v548_v22 = vpop.f32.mrb[2].mxu0 }
 0x16a   : > { %567 = vst [vmem:[#allocation2] sm:$0xff] %v561_v14  ;;  %v639_v24 = vadd.f32 %v623_v21, %v576_v12  ;;  %v563_v25 = vadd.f32 %v548_v22, %v477_v13  ;;  %v625_v26 = vpop.f32.mrb[2].mxu1  ;;  %v550_v27 = vpop.f32.mrb[3].mxu0 }
 0x16b   : > { %644 = vst [vmem:[#allocation3] sm:$0xff] %v638_v19  ;;  %569 = vst.msk [vmem:[#allocation2 + $0x8] sm:$0xff] %vm568_vm4, %v562_v20  ;;  %v640_v28 = vadd.f32 %v625_v26, %v577_v17  ;;  %v564_v29 = vadd.f32 %v550_v27, %v478_v18  ;;  %v627_v30 = vpop.f32.mrb[3].mxu1 }
 0x16c   : > { %645 = vst.msk [vmem:[#allocation3 + $0x8] sm:$0xff] %vm568_vm4, %v639_v24  ;;  %570 = vst [vmem:[#allocation2 + $0x10] sm:$0xff] %v563_v25  ;;  %v641_v31 = vadd.f32 %v627_v30, %v578_v23 }
 0x16d   : > { %646 = vst [vmem:[#allocation3 + $0x10] sm:$0xff] %v640_v28  ;;  %571 = vst.msk [vmem:[#allocation2 + $0x18] sm:$0xff] %vm568_vm4, %v564_v29 }
 0x16e   : > { %647 = vst.msk [vmem:[#allocation3 + $0x18] sm:$0xff] %vm568_vm4, %v641_v31  ;;  %653 = sbr.rel (%p2037_p9) target bundleno = 1297 (0x511), region = 56 }
 0x16f   : > { %v554_v35 = vpop.f32.mrb[4].mxu0 }
 0x170   : > { %v565_v37 = vadd.f32 %v554_v35, %v479_v32  ;;  %v631_v38 = vpop.f32.mrb[4].mxu1  ;;  %v556_v39 = vpop.f32.mrb[5].mxu0 }
 0x171   : > { %v642_v40 = vadd.f32 %v631_v38, %v579_v33  ;;  %v566_v41 = vadd.f32 %v556_v39, %v480_v34  ;;  %v633_v42 = vpop.f32.mrb[5].mxu1  ;;  %v558_v43 = vpop.f32.mrb[6].mxu0 }
 0x172   : > { %572 = vst [vmem:[#allocation2 + $0x20] sm:$0x1f] %v565_v37  ;;  %v643_v44 = vadd.f32 %v633_v42, %v580_v36  ;;  %v635_v45 = vpop.f32.mrb[6].mxu1  ;;  %v559_v46 = vpop.f32.mrb[7].mxu0 }
 0x173   : > { %648 = vst [vmem:[#allocation3 + $0x20] sm:$0x1f] %v642_v40  ;;  %574 = vst.msk [vmem:[#allocation2 + $0x28] sm:$0x1f] %vm573_vm5, %v566_v41  ;;  %v636_v47 = vpop.f32.mrb[7].mxu1 }
 0x174   : > { %649 = vst.msk [vmem:[#allocation3 + $0x28] sm:$0x1f] %vm573_vm5, %v643_v44 }
 0x175   : > { %v654_v48 = vld [vmem:[%s4160_s3] sm:$0xff]  ;;  %v655_v49 = vld [vmem:[%s4160_s3 + $0x8] sm:$0xff]  ;;  %v656_v50 = vld [vmem:[%s4160_s3 + $0x10] sm:$0xff]  ;;  %v2482_v51 = vmov 0.0|0.0   ;;  %v2483_v54 = vmov 0   ;;  %v2484_v46 = vmov 1  }
 0x176   : > { %2120 = vmatprep.subr.bf16.mxu0 %v2482_v51  ;;  %2162 = vmatprep.subr.bf16.mxu1 %v2482_v51  ;;  %v2121_v52 = vpack.c.bf16 %v655_v49, %v654_v48  ;;  %v657_v53 = vld [vmem:[%s4160_s3 + $0x18] sm:$0xff]  ;;  %v658_v56 = vld [vmem:[%s4160_s3 + $0x20] sm:$0xff]  ;;  %v659_v57 = vld [vmem:[%s4160_s3 + $0x28] sm:$0xff]  ;;  %vm912_vm6 = vcmask 1044480   ;;  %vm1903_vm7 = vcmask 0  }
 0x177   : > { %2303 = vset.pattern.permute.xlu1 %v2483_v54  ;;  %2302 = vset.pattern.permute.xlu0 %v2483_v54  ;;  %v2124_v55 = vpack.c.bf16 %v657_v53, %v656_v50  ;;  %v2127_v58 = vpack.c.bf16 %v659_v57, %v658_v56  ;;  %v660_v59 = vld [vmem:[%s4160_s3 + $0x30] sm:$0xff]  ;;  %v661_v60 = vld [vmem:[%s4160_s3 + $0x38] sm:$0xff]  ;;  %v683_v61 = vld [vmem:[#allocation2 + $0x8] sm:$0xff]  ;;  %v2485_v53 = vmov 2   ;;  %v2487_v56 = vmov 4  }
 0x178   : > { %2122 = vmatpush1.bf16.msra.mxu0 %v2121_v52  ;;  %2164 = vmatpush1.bf16.msra.mxu1 %v2121_v52  ;;  %v778_v62 = vld [vmem:[#allocation3 + $0x8] sm:$0xff]  ;;  %v2130_v63 = vpack.c.bf16 %v661_v60, %v660_v59  ;;  %v662_v0 = vld [vmem:[%s4160_s3 + $0x40] sm:$0xff]  ;;  %v663_v1 = vld [vmem:[%s4160_s3 + $0x48] sm:$0xff]  ;;  %v2488_v57 = vmov 6  }
 0x179   : > { %2123 = vmatprep.subr.bf16.mxu0 %v2482_v51  ;;  %2165 = vmatprep.subr.bf16.mxu1 %v2482_v51  ;;  %v2133_v2 = vpack.c.bf16 %v663_v1, %v662_v0  ;;  %v664_v3 = vld [vmem:[%s4160_s3 + $0x50] sm:$0xff]  ;;  %v665_v4 = vld [vmem:[%s4160_s3 + $0x58] sm:$0xff]  ;;  %v666_v6 = vld [vmem:[%s4160_s3 + $0x60] sm:$0xff] }
 0x17a   : > { %2038 = vmatprep.mubr.msk.f32.mxu0 %vm568_vm4, %v683_v61  ;;  %2041 = vmatprep.mubr.msk.f32.mxu1 %vm568_vm4, %v778_v62  ;;  %v2136_v5 = vpack.c.bf16 %v665_v4, %v664_v3  ;;  %v667_v7 = vld [vmem:[%s4160_s3 + $0x68] sm:$0xff]  ;;  %v668_v9 = vld [vmem:[%s4160_s3 + $0x70] sm:$0xff]  ;;  %v669_v10 = vld [vmem:[%s4160_s3 + $0x78] sm:$0xff] }
 0x17b   : > { %v2139_v8 = vpack.c.bf16 %v667_v7, %v666_v6  ;;  %v2142_v11 = vpack.c.bf16 %v669_v10, %v668_v9  ;;  %v670_v12 = vld [vmem:[%s4160_s3 + $0x80] sm:$0xff]  ;;  %v671_v13 = vld [vmem:[%s4160_s3 + $0x88] sm:$0xff]  ;;  %v672_v15 = vld [vmem:[%s4160_s3 + $0x90] sm:$0xff] }
 0x17c   : > { %2125 = vmatpush1.bf16.msra.mxu0 %v2124_v55  ;;  %2167 = vmatpush1.bf16.msra.mxu1 %v2124_v55  ;;  %v2145_v14 = vpack.c.bf16 %v671_v13, %v670_v12  ;;  %v673_v16 = vld [vmem:[%s4160_s3 + $0x98] sm:$0xff]  ;;  %v674_v18 = vld [vmem:[%s4160_s3 + $0xa0] sm:$0xff]  ;;  %v675_v19 = vld [vmem:[%s4160_s3 + $0xa8] sm:$0xff]  ;;  %v2486_v55 = vmov 3  }
 0x17d   : > { %2126 = vmatprep.subr.bf16.mxu0 %v2482_v51  ;;  %2168 = vmatprep.subr.bf16.mxu1 %v2482_v51  ;;  %v2148_v17 = vpack.c.bf16 %v673_v16, %v672_v15  ;;  %v2151_v20 = vpack.c.bf16 %v675_v19, %v674_v18  ;;  %v676_v21 = vld [vmem:[%s4160_s3 + $0xb0] sm:$0xff]  ;;  %v677_v22 = vld [vmem:[%s4160_s3 + $0xb8] sm:$0xff]  ;;  %v678_v24 = vld [vmem:[%s4160_s3 + $0xc0] sm:$0xff] }
 0x17e   : > { %v2154_v23 = vpack.c.bf16 %v677_v22, %v676_v21  ;;  %v679_v25 = vld [vmem:[%s4160_s3 + $0xc8] sm:$0xff]  ;;  %v680_v27 = vld [vmem:[%s4160_s3 + $0xd0] sm:$0xff]  ;;  %v681_v28 = vld [vmem:[%s4160_s3 + $0xd8] sm:$0xff] }
 0x17f   : > { %v2157_v26 = vpack.c.bf16 %v679_v25, %v678_v24  ;;  %v2160_v29 = vpack.c.bf16 %v681_v28, %v680_v27  ;;  %v682_v30 = vld [vmem:[#allocation2] sm:$0xff]  ;;  %v777_v31 = vld [vmem:[#allocation3] sm:$0xff]  ;;  %v685_v32 = vld [vmem:[#allocation2 + $0x18] sm:$0xff] }
 0x180   : > { %2128 = vmatpush1.bf16.msra.mxu0 %v2127_v58  ;;  %2170 = vmatpush1.bf16.msra.mxu1 %v2127_v58  ;;  %v780_v33 = vld [vmem:[#allocation3 + $0x18] sm:$0xff]  ;;  %v684_v34 = vld [vmem:[#allocation2 + $0x10] sm:$0xff]  ;;  %v779_v35 = vld [vmem:[#allocation3 + $0x10] sm:$0xff]  ;;  %v2489_v58 = vmov 5  }
 0x181   : > { %2129 = vmatprep.subr.bf16.mxu0 %v2482_v51  ;;  %2171 = vmatprep.subr.bf16.mxu1 %v2482_v51  ;;  %v782_v36 = vld [vmem:[#allocation3 + $0x28] sm:$0x1f]  ;;  %v687_v37 = vld [vmem:[#allocation2 + $0x28] sm:$0x1f]  ;;  %v781_v38 = vld [vmem:[#allocation3 + $0x20] sm:$0x1f] }
 0x182   : > { %v686_v39 = vld [vmem:[#allocation2 + $0x20] sm:$0x1f]  ;;  %v874_v6 = vld [vmem:[%s4161_s4 + $0x10] sm:$0xff]  ;;  %v875_v7 = vld [vmem:[%s4161_s4 + $0x18] sm:$0xff] }
 0x183   : > { %v872_v4 = vld [vmem:[%s4161_s4] sm:$0xff]  ;;  %v2045_v10 = vld [vmem:[%s4161_s4 + $0x68] sm:$0xff]  ;;  %v2047_v12 = vld [vmem:[%s4161_s4 + $0x78] sm:$0xff] }
 0x184   : > { %2131 = vmatpush1.bf16.msra.mxu0 %v2130_v63  ;;  %2173 = vmatpush1.bf16.msra.mxu1 %v2130_v63  ;;  %v2056_v18 = vld [vmem:[%s4161_s4 + $0xc0] sm:$0xff]  ;;  %v2058_v24 = vld [vmem:[%s4161_s4 + $0xd0] sm:$0xff]  ;;  %v2059_v25 = vld [vmem:[%s4161_s4 + $0xd8] sm:$0xff] }
 0x185   : > { %2132 = vmatprep.subr.bf16.mxu0 %v2482_v51  ;;  %2174 = vmatprep.subr.bf16.mxu1 %v2482_v51 }
 0x188   : > { %2134 = vmatpush1.bf16.msra.mxu0 %v2133_v2  ;;  %2176 = vmatpush1.bf16.msra.mxu1 %v2133_v2 }
 0x189   : > { %2135 = vmatprep.subr.bf16.mxu0 %v2482_v51  ;;  %2177 = vmatprep.subr.bf16.mxu1 %v2482_v51 }
 0x18c   : > { %2137 = vmatpush1.bf16.msra.mxu0 %v2136_v5  ;;  %2179 = vmatpush1.bf16.msra.mxu1 %v2136_v5  ;;  %v873_v5 = vld [vmem:[%s4161_s4 + $0x8] sm:$0xff] }
 0x18d   : > { %2138 = vmatprep.subr.bf16.mxu0 %v2482_v51  ;;  %2180 = vmatprep.subr.bf16.mxu1 %v2482_v51 }
 0x190   : > { %2140 = vmatpush1.bf16.msra.mxu0 %v2139_v8  ;;  %2182 = vmatpush1.bf16.msra.mxu1 %v2139_v8  ;;  %v2044_v8 = vld [vmem:[%s4161_s4 + $0x60] sm:$0xff] }
 0x191   : > { %2141 = vmatprep.subr.bf16.mxu0 %v2482_v51  ;;  %2183 = vmatprep.subr.bf16.mxu1 %v2482_v51 }
 0x194   : > { %2143 = vmatpush1.bf16.msra.mxu0 %v2142_v11  ;;  %2185 = vmatpush1.bf16.msra.mxu1 %v2142_v11  ;;  %v2046_v11 = vld [vmem:[%s4161_s4 + $0x70] sm:$0xff] }
 0x195   : > { %2144 = vmatprep.subr.bf16.mxu0 %v2482_v51  ;;  %2186 = vmatprep.subr.bf16.mxu1 %v2482_v51 }
 0x198   : > { %2146 = vmatpush1.bf16.msra.mxu0 %v2145_v14  ;;  %2188 = vmatpush1.bf16.msra.mxu1 %v2145_v14 }
 0x199   : > { %2147 = vmatprep.subr.bf16.mxu0 %v2482_v51  ;;  %2189 = vmatprep.subr.bf16.mxu1 %v2482_v51 }
 0x19c   : > { %2149 = vmatpush1.bf16.msra.mxu0 %v2148_v17  ;;  %2191 = vmatpush1.bf16.msra.mxu1 %v2148_v17 }
 0x19d   : > { %2150 = vmatprep.subr.bf16.mxu0 %v2482_v51  ;;  %2192 = vmatprep.subr.bf16.mxu1 %v2482_v51 }
 0x1a0   : > { %2152 = vmatpush1.bf16.msra.mxu0 %v2151_v20  ;;  %2194 = vmatpush1.bf16.msra.mxu1 %v2151_v20 }
 0x1a1   : > { %2153 = vmatprep.subr.bf16.mxu0 %v2482_v51  ;;  %2195 = vmatprep.subr.bf16.mxu1 %v2482_v51 }
 0x1a4   : > { %2155 = vmatpush1.bf16.msra.mxu0 %v2154_v23  ;;  %2197 = vmatpush1.bf16.msra.mxu1 %v2154_v23  ;;  %v2057_v23 = vld [vmem:[%s4161_s4 + $0xc8] sm:$0xff] }
 0x1a5   : > { %2156 = vmatprep.subr.bf16.mxu0 %v2482_v51  ;;  %2198 = vmatprep.subr.bf16.mxu1 %v2482_v51 }
 0x1a8   : > { %2158 = vmatpush1.bf16.msra.mxu0 %v2157_v26  ;;  %2200 = vmatpush1.bf16.msra.mxu1 %v2157_v26 }
 0x1a9   : > { %2159 = vmatprep.subr.bf16.mxu0 %v2482_v51  ;;  %2201 = vmatprep.subr.bf16.mxu1 %v2482_v51 }
 0x1ac   : > { %2161 = vmatpush1.bf16.msra.mxu0 %v2160_v29  ;;  %2203 = vmatpush1.bf16.msra.mxu1 %v2160_v29 }
 0x1af   : > { %762 = vmatmul.mubr.f32.vlgmr.msra.gmra.mrb[0].mxu0 %v682_v30  ;;  %857 = vmatmul.mubr.f32.vlgmr.msra.gmra.mrb[0].mxu1 %v777_v31  ;;  %v2068_v30 = vld [vmem:[%s4161_s4 + $0x120] sm:$0xff]  ;;  %v2069_v31 = vld [vmem:[%s4161_s4 + $0x128] sm:$0xff] }
 0x1b0   : > { %2039 = vmatprep.mubr.msk.f32.mxu0 %vm568_vm4, %v685_v32  ;;  %2042 = vmatprep.mubr.msk.f32.mxu1 %vm568_vm4, %v780_v33 }
 0x1b3   : > { %767 = vmatmul.mubr.f32.gmra.mrb[2].mxu0 %v684_v34  ;;  %862 = vmatmul.mubr.f32.gmra.mrb[2].mxu1 %v779_v35 }
 0x1b4   : > { %2043 = vmatprep.mubr.msk.f32.mxu1 %vm568_vm4, %v782_v36  ;;  %2040 = vmatprep.mubr.msk.f32.mxu0 %vm568_vm4, %v687_v37  ;;  %v2070_v36 = vld [vmem:[%s4161_s4 + $0x130] sm:$0xff]  ;;  %v2071_v37 = vld [vmem:[%s4161_s4 + $0x138] sm:$0xff] }
 0x1b7   : > { %867 = vmatmul.mubr.f32.gmra.mrb[4].mxu1 %v781_v38  ;;  %772 = vmatmul.mubr.f32.gmra.mrb[4].mxu0 %v686_v39  ;;  %v2080_v38 = vld [vmem:[%s4161_s4 + $0x180] sm:$0xff] }
 0x282   : > { %v763_v40 = vpop.f32.mrb[0].mxu0  ;;  %v858_v41 = vpop.f32.mrb[0].mxu1 }
 0x283   : > { %954 = vperm.xlu1 %2303, %v858_v41   ;;  %v860_v42 = vpop.f32.mrb[1].mxu1  ;;  %886 = vperm.xlu0 %2302, %v763_v40   ;;  %v765_v43 = vpop.f32.mrb[1].mxu0 }
 0x286   : > { %v2933_v44 = vpop.f32.mrb[2].mxu0  ;;  %v2935_v45 = vpop.f32.mrb[2].mxu1 }
 0x287   : > { %2305 = vset.pattern.permute.xlu1 %v2484_v46  ;;  %2304 = vset.pattern.permute.xlu0 %v2484_v46  ;;  %v865_v47 = vpop.f32.mrb[3].mxu1  ;;  %v770_v48 = vpop.f32.mrb[3].mxu0 }
 0x288   : > { %1097 = vperm.xlu1 %2305, %v858_v41   ;;  %1033 = vperm.xlu0 %2304, %v763_v40  }
 0x28a   : > { %v2939_v49 = vpop.f32.mrb[4].mxu1  ;;  %v2941_v50 = vpop.f32.mrb[4].mxu0 }
 0x28b   : > { %v775_v51 = vpop.f32.mrb[5].mxu0  ;;  %v870_v52 = vpop.f32.mrb[5].mxu1 }
 0x28c   : > { %2307 = vset.pattern.permute.xlu1 %v2485_v53  ;;  %2306 = vset.pattern.permute.xlu0 %v2485_v53  ;;  %v3124_v52 = vld [vmem:[%s4161_s4 + $0x240] sm:$0xff] }
 0x28d   : > { %1238 = vperm.xlu1 %2307, %v858_v41   ;;  %1174 = vperm.xlu0 %2306, %v763_v40  }
 0x291   : > { %2308 = vset.pattern.permute.xlu1 %v2486_v55  ;;  %2309 = vset.pattern.permute.xlu0 %v2487_v56 }
 0x292   : > { %1315 = vperm.xlu1 %2308, %v763_v40   ;;  %1456 = vperm.xlu0 %2309, %v763_v40  }
 0x296   : > { %1379 = vperm.xlu1 %2308, %v858_v41   ;;  %2312 = vset.pattern.permute.xlu0 %v2488_v57 }
 0x297   : > { %1738 = vperm.xlu0 %2312, %v763_v40  }
 0x29a   : > { %2310 = vset.pattern.permute.xlu1 %v2487_v56 }
 0x29b   : > { %1520 = vperm.xlu1 %2310, %v858_v41   ;;  %2314 = vset.pattern.permute.xlu0 %v2483_v54 }
 0x29c   : > { %891 = vperm.xlu0 %2314, %v2933_v44  }
 0x29f   : > { %2311 = vset.pattern.permute.xlu1 %v2489_v58 }
 0x2a0   : > { %1597 = vperm.xlu1 %2311, %v763_v40   ;;  %2317 = vset.pattern.permute.xlu0 %v2484_v46 }
 0x2a1   : > { %1101 = vperm.xlu0 %2317, %v2935_v45  }
 0x2a4   : > { %1661 = vperm.xlu1 %2311, %v858_v41  }
 0x2a5   : > { %2319 = vset.pattern.permute.xlu0 %v2485_v53 }
 0x2a6   : > { %1242 = vperm.xlu0 %2319, %v2935_v45  }
 0x2a8   : > { %2313 = vset.pattern.permute.xlu1 %v2488_v57 }
 0x2a9   : > { %1802 = vperm.xlu1 %2313, %v858_v41  }
 0x2aa   : > { %2320 = vset.pattern.permute.xlu0 %v2486_v55 }
 0x2ab   : > { %1319 = vperm.xlu0 %2320, %v2933_v44  }
 0x2ad   : > { %2315 = vset.pattern.permute.xlu1 %v2483_v54 }
 0x2ae   : > { %959 = vperm.xlu1 %2315, %v2935_v45  }
 0x2af   : > { %2323 = vset.pattern.permute.xlu0 %v2487_v56 }
 0x2b0   : > { %1524 = vperm.xlu0 %2323, %v2935_v45  }
 0x2b2   : > { %2316 = vset.pattern.permute.xlu1 %v2484_v46 }
 0x2b3   : > { %1037 = vperm.xlu1 %2316, %v2933_v44  }
 0x2b4   : > { %2324 = vset.pattern.permute.xlu0 %v2489_v58 }
 0x2b5   : > { %1601 = vperm.xlu0 %2324, %v2933_v44  }
 0x2b7   : > { %2318 = vset.pattern.permute.xlu1 %v2485_v53 }
 0x2b8   : > { %1178 = vperm.xlu1 %2318, %v2933_v44  }
 0x2b9   : > { %2327 = vset.pattern.permute.xlu0 %v2488_v57 }
 0x2ba   : > { %1806 = vperm.xlu0 %2327, %v2935_v45  }
 0x2bc   : > { %2321 = vset.pattern.permute.xlu1 %v2486_v55 }
 0x2bd   : > { %1383 = vperm.xlu1 %2321, %v2935_v45  }
 0x2be   : > { %2329 = vset.pattern.permute.xlu0 %v2483_v54 }
 0x2bf   : > { %964 = vperm.xlu0 %2329, %v2939_v49  }
 0x2c1   : > { %2322 = vset.pattern.permute.xlu1 %v2487_v56 }
 0x2c2   : > { %1460 = vperm.xlu1 %2322, %v2933_v44  }
 0x2c3   : > { %2332 = vset.pattern.permute.xlu0 %v2485_v53 }
 0x2c4   : > { %1246 = vperm.xlu0 %2332, %v2939_v49  }
 0x2c6   : > { %2325 = vset.pattern.permute.xlu1 %v2489_v58 }
 0x2c7   : > { %1665 = vperm.xlu1 %2325, %v2935_v45   ;;  %v2082_v45 = vld [vmem:[%s4161_s4 + $0x190] sm:$0xff] }
 0x2c8   : > { %2333 = vset.pattern.permute.xlu0 %v2486_v55 }
 0x2c9   : > { %1323 = vperm.xlu0 %2333, %v2941_v50  }
 0x2cb   : > { %2326 = vset.pattern.permute.xlu1 %v2488_v57 }
 0x2cc   : > { %1742 = vperm.xlu1 %2326, %v2933_v44   ;;  %v2081_v44 = vld [vmem:[%s4161_s4 + $0x188] sm:$0xff] }
 0x2cd   : > { %2336 = vset.pattern.permute.xlu0 %v2487_v56 }
 0x2ce   : > { %1528 = vperm.xlu0 %2336, %v2939_v49  }
 0x2d0   : > { %2328 = vset.pattern.permute.xlu1 %v2483_v54 }
 0x2d1   : > { %896 = vperm.xlu1 %2328, %v2941_v50  }
 0x2d2   : > { %2337 = vset.pattern.permute.xlu0 %v2489_v58 }
 0x2d3   : > { %1605 = vperm.xlu0 %2337, %v2941_v50  }
 0x2d5   : > { %2330 = vset.pattern.permute.xlu1 %v2484_v46  ;;  %v2083_v46 = vld [vmem:[%s4161_s4 + $0x198] sm:$0xff] }
 0x2d6   : > { %1041 = vperm.xlu1 %2330, %v2941_v50  }
 0x2d7   : > { %2340 = vset.pattern.permute.xlu0 %v2488_v57 }
 0x2d8   : > { %1810 = vperm.xlu0 %2340, %v2939_v49  }
 0x2da   : > { %1105 = vperm.xlu1 %2330, %v2939_v49  }
 0x2de   : > { %2331 = vset.pattern.permute.xlu1 %v2485_v53  ;;  %v3129_v53 = vld [vmem:[%s4161_s4 + $0x20] sm:$0xff] }
 0x2df   : > { %1182 = vperm.xlu1 %2331, %v2941_v50  }
 0x2e3   : > { %2334 = vset.pattern.permute.xlu1 %v2486_v55 }
 0x2e4   : > { %1387 = vperm.xlu1 %2334, %v2939_v49  }
 0x2e8   : > { %2335 = vset.pattern.permute.xlu1 %v2487_v56 }
 0x2e9   : > { %1464 = vperm.xlu1 %2335, %v2941_v50  }
 0x2ed   : > { %2338 = vset.pattern.permute.xlu1 %v2489_v58 }
 0x2ee   : > { %1669 = vperm.xlu1 %2338, %v2939_v49  }
 0x2f2   : > { %2339 = vset.pattern.permute.xlu1 %v2488_v57 }
 0x2f3   : > { %1746 = vperm.xlu1 %2339, %v2941_v50  }
 0x302   : > { %v955_v54 = vpop.permute.xlu1 %954  ;;  %v887_v59 = vpop.permute.xlu0 %886 }
 0x303   : > { %v3035_v14 = vmul.f32 %v955_v54, %v872_v4  ;;  %v3037_v15 = vmul.f32 %v955_v54, %v873_v5  ;;  %v3039_v16 = vmul.f32 %v955_v54, %v874_v6  ;;  %v3041_v17 = vmul.f32 %v955_v54, %v875_v7  ;;  %v3142_v54 = vld [vmem:[%s4161_s4 + $0x28] sm:$0xff] }
 0x304   : > { %v3046_v19 = vmul.f32 %v887_v59, %v872_v4  ;;  %v3048_v20 = vmul.f32 %v887_v59, %v873_v5  ;;  %v3050_v21 = vmul.f32 %v887_v59, %v874_v6  ;;  %v3052_v22 = vmul.f32 %v887_v59, %v875_v7  ;;  %v3147_v59 = vld [vmem:[%s4161_s4 + $0x30] sm:$0xff]  ;;  %v3169_v4 = vld [vmem:[%s4161_s4 + $0x248] sm:$0xff]  ;;  %v3179_v6 = vld [vmem:[%s4161_s4 + $0x258] sm:$0xff] }
 0x305   : > { %v3174_v5 = vld [vmem:[%s4161_s4 + $0x250] sm:$0xff] }
 0x307   : > { %v1098_v60 = vpop.permute.xlu1 %1097  ;;  %v1034_v61 = vpop.permute.xlu0 %1033 }
 0x308   : > { %v3063_v26 = vmul.f32 %v2044_v8, %v1098_v60  ;;  %v3065_v27 = vmul.f32 %v2045_v10, %v1098_v60  ;;  %v3067_v28 = vmul.f32 %v2046_v11, %v1098_v60  ;;  %v3069_v29 = vmul.f32 %v2047_v12, %v1098_v60  ;;  %v3152_v60 = vld [vmem:[%s4161_s4 + $0x38] sm:$0xff] }
 0x309   : > { %v3077_v32 = vmul.f32 %v2044_v8, %v1034_v61  ;;  %v3079_v33 = vmul.f32 %v2045_v10, %v1034_v61  ;;  %v3081_v34 = vmul.f32 %v2046_v11, %v1034_v61  ;;  %v3083_v35 = vmul.f32 %v2047_v12, %v1034_v61  ;;  %v3196_v12 = vld [vmem:[%s4161_s4 + $0x80] sm:$0xff] }
 0x30b   : > { %4191 = vst [vmem:[#allocation11_spill] sm:$0xff] %v3077_v32  ;;  %4192 = vst [vmem:[#allocation12_spill] sm:$0xff] %v3079_v33 }
 0x30c   : > { %v1239_v62 = vpop.permute.xlu1 %1238  ;;  %v1175_v63 = vpop.permute.xlu0 %1174  ;;  %4193 = vst [vmem:[#allocation13_spill] sm:$0xff] %v3081_v34  ;;  %4194 = vst [vmem:[#allocation14_spill] sm:$0xff] %v3083_v35 }
 0x30d   : > { %v3096_v40 = vmul.f32 %v2056_v18, %v1239_v62  ;;  %v3098_v41 = vmul.f32 %v2057_v23, %v1239_v62  ;;  %v3100_v42 = vmul.f32 %v2058_v24, %v1239_v62  ;;  %v3102_v43 = vmul.f32 %v2059_v25, %v1239_v62 }
 0x30e   : > { %v3113_v48 = vmul.f32 %v2056_v18, %v1175_v63  ;;  %v3115_v49 = vmul.f32 %v2057_v23, %v1175_v63  ;;  %v3117_v50 = vmul.f32 %v2058_v24, %v1175_v63  ;;  %v3119_v51 = vmul.f32 %v2059_v25, %v1175_v63 }
 0x310   : > { %4195 = vst [vmem:[#allocation15_spill] sm:$0xff] %v3113_v48  ;;  %4196 = vst [vmem:[#allocation16_spill] sm:$0xff] %v3115_v49 }
 0x311   : > { %v1316_v0 = vpop.permute.xlu1 %1315  ;;  %v3001_v1 = vpop.permute.xlu0 %1456  ;;  %4197 = vst [vmem:[#allocation17_spill] sm:$0xff] %v3117_v50  ;;  %4198 = vst [vmem:[#allocation18_spill] sm:$0xff] %v3119_v51 }
 0x312   : > { %v3131_v55 = vmul.f32 %v2068_v30, %v1316_v0  ;;  %v3133_v56 = vmul.f32 %v2069_v31, %v1316_v0  ;;  %v3135_v57 = vmul.f32 %v2070_v36, %v1316_v0  ;;  %v3137_v58 = vmul.f32 %v2071_v37, %v1316_v0 }
 0x313   : > { %v3155_v61 = vmul.f32 %v2080_v38, %v3001_v1  ;;  %v3158_v62 = vmul.f32 %v2081_v44, %v3001_v1  ;;  %v3161_v63 = vmul.f32 %v2082_v45, %v3001_v1  ;;  %v3164_v0 = vmul.f32 %v2083_v46, %v3001_v1 }
 0x315   : > { %v3003_v2 = vpop.permute.xlu1 %1379  ;;  %4199 = vst [vmem:[#allocation19_spill] sm:$0xff] %v3155_v61  ;;  %4200 = vst [vmem:[#allocation20_spill] sm:$0xff] %v3158_v62  ;;  %v2092_v62 = vld [vmem:[%s4161_s4 + $0x1e0] sm:$0xff] }
 0x316   : > { %v3005_v3 = vpop.permute.xlu0 %1738  ;;  %4201 = vst [vmem:[#allocation21_spill] sm:$0xff] %v3161_v63  ;;  %4202 = vst [vmem:[#allocation22_spill] sm:$0xff] %v3164_v0  ;;  %v3182_v8 = vmul.f32 %v2068_v30, %v3003_v2  ;;  %v3185_v1 = vmul.f32 %v2069_v31, %v3003_v2  ;;  %v3188_v10 = vmul.f32 %v2070_v36, %v3003_v2  ;;  %v3214_v30 = vld [vmem:[%s4161_s4 + $0x90] sm:$0xff]  ;;  %v3219_v31 = vld [vmem:[%s4161_s4 + $0x98] sm:$0xff] }
 0x317   : > { %v3191_v11 = vmul.f32 %v2071_v37, %v3003_v2  ;;  %v3209_v2 = vld [vmem:[%s4161_s4 + $0x88] sm:$0xff]  ;;  %v3223_v37 = vmul.f32 %v3124_v52, %v3005_v3  ;;  %v3231_v0 = vmul.f32 %v3174_v5, %v3005_v3  ;;  %v3235_v63 = vmul.f32 %v3179_v6, %v3005_v3 }
 0x318   : > { %4203 = vst [vmem:[#allocation23_spill] sm:$0xff] %v3182_v8  ;;  %4204 = vst [vmem:[#allocation24_spill] sm:$0xff] %v3185_v1  ;;  %v3278_v1 = vld [vmem:[%s4161_s4 + $0xf0] sm:$0xff]  ;;  %v3283_v8 = vld [vmem:[%s4161_s4 + $0xf8] sm:$0xff] }
 0x319   : > { %4205 = vst [vmem:[#allocation25_spill] sm:$0xff] %v3188_v10  ;;  %4206 = vst [vmem:[#allocation26_spill] sm:$0xff] %v3191_v11  ;;  %v2095_v11 = vld [vmem:[%s4161_s4 + $0x1f8] sm:$0xff]  ;;  %v3273_v10 = vld [vmem:[%s4161_s4 + $0xe8] sm:$0xff] }
 0x31a   : > { %v3022_v9 = vpop.permute.xlu1 %1520  ;;  %4207 = vst [vmem:[#allocation27_spill] sm:$0xff] %v3223_v37  ;;  %4209 = vst [vmem:[#allocation29_spill] sm:$0xff] %v3231_v0  ;;  %v2093_v37 = vld [vmem:[%s4161_s4 + $0x1e8] sm:$0xff] }
 0x31b   : > { %v3033_v13 = vpop.permute.xlu0 %891  ;;  %4210 = vst [vmem:[#allocation30_spill] sm:$0xff] %v3235_v63  ;;  %v3244_v61 = vmul.f32 %v2080_v38, %v3022_v9  ;;  %v3250_v0 = vmul.f32 %v2082_v45, %v3022_v9  ;;  %v2094_v63 = vld [vmem:[%s4161_s4 + $0x1f0] sm:$0xff]  ;;  %v3264_v38 = vld [vmem:[%s4161_s4 + $0xe0] sm:$0xff] }
 0x31c   : > { %v903_v18 = vmul.f32 %v3033_v13, %v3129_v53  ;;  %v904_v23 = vmul.f32 %v3033_v13, %v3142_v54  ;;  %v905_v24 = vmul.f32 %v3033_v13, %v3147_v59  ;;  %v906_v25 = vmul.f32 %v3033_v13, %v3152_v60 }
 0x31d   : > { %v3227_v13 = vmul.f32 %v3169_v4, %v3005_v3  ;;  %v3253_v3 = vmul.f32 %v2083_v46, %v3022_v9 }
 0x31e   : > { %v3286_v50 = vadd.f32 %v903_v18, %v3046_v19  ;;  %v3292_v49 = vadd.f32 %v905_v24, %v3050_v21  ;;  %v3295_v48 = vadd.f32 %v906_v25, %v3052_v22  ;;  %v3321_v25 = vld [vmem:[%s4161_s4 + $0x148] sm:$0xff] }
 0x31f   : > { %v3094_v39 = vpop.permute.xlu1 %1597  ;;  %4208 = vst [vmem:[#allocation28_spill] sm:$0xff] %v3227_v13  ;;  %v3247_v13 = vmul.f32 %v2081_v44, %v3022_v9 }
 0x320   : > { %v1102_v47 = vpop.permute.xlu0 %1101  ;;  %4211 = vst [vmem:[#allocation31_spill] sm:$0xff] %v3286_v50  ;;  %4213 = vst [vmem:[#allocation33_spill] sm:$0xff] %v3292_v49  ;;  %v3298_v35 = vmul.f32 %v2092_v62, %v3094_v39  ;;  %v3301_v34 = vmul.f32 %v2093_v37, %v3094_v39  ;;  %v3304_v33 = vmul.f32 %v2094_v63, %v3094_v39 }
 0x321   : > { %v1112_v44 = vmul.f32 %v3196_v12, %v1102_v47  ;;  %v1113_v45 = vmul.f32 %v3209_v2, %v1102_v47  ;;  %v1114_v9 = vmul.f32 %v3214_v30, %v1102_v47  ;;  %v1115_v46 = vmul.f32 %v3219_v31, %v1102_v47  ;;  %4214 = vst [vmem:[#allocation34_spill] sm:$0xff] %v3295_v48  ;;  %v3331_v48 = vld [vmem:[%s4161_s4 + $0x158] sm:$0xff] }
 0x322   : > { %v3289_v47 = vadd.f32 %v904_v23, %v3048_v20  ;;  %4215 = vst [vmem:[#allocation35_spill] sm:$0xff] %v3298_v35  ;;  %4216 = vst [vmem:[#allocation36_spill] sm:$0xff] %v3301_v34  ;;  %v3307_v19 = vmul.f32 %v2095_v11, %v3094_v39  ;;  %v3312_v20 = vld [vmem:[%s4161_s4 + $0x140] sm:$0xff]  ;;  %v3326_v39 = vld [vmem:[%s4161_s4 + $0x150] sm:$0xff] }
 0x323   : > { %v1662_v7 = vpop.permute.xlu1 %1661  ;;  %4217 = vst [vmem:[#allocation37_spill] sm:$0xff] %v3304_v33  ;;  %v3334_v49 = vadd.f32 %v1112_v44, %v3063_v26  ;;  %v3343_v50 = vadd.f32 %v1115_v46, %v3069_v29 }
 0x324   : > { %4212 = vst [vmem:[#allocation32_spill] sm:$0xff] %v3289_v47  ;;  %4218 = vst [vmem:[#allocation38_spill] sm:$0xff] %v3307_v19  ;;  %v3340_v47 = vadd.f32 %v1114_v9, %v3067_v28  ;;  %v3345_v19 = vmul.f32 %v2092_v62, %v1662_v7  ;;  %v3347_v33 = vmul.f32 %v2093_v37, %v1662_v7 }
 0x325   : > { %v1243_v36 = vpop.permute.xlu0 %1242  ;;  %4219 = vst [vmem:[#allocation39_spill] sm:$0xff] %v3334_v49  ;;  %4222 = vst [vmem:[#allocation42_spill] sm:$0xff] %v3343_v50  ;;  %v3349_v34 = vmul.f32 %v2094_v63, %v1662_v7  ;;  %v3351_v35 = vmul.f32 %v2095_v11, %v1662_v7  ;;  %v3372_v11 = vld [vmem:[%s4161_s4 + $0x1a0] sm:$0xff] }
 0x326   : > { %v1253_v22 = vmul.f32 %v3264_v38, %v1243_v36  ;;  %v1254_v18 = vmul.f32 %v3273_v10, %v1243_v36  ;;  %v1255_v23 = vmul.f32 %v3278_v1, %v1243_v36  ;;  %v1256_v24 = vmul.f32 %v3283_v8, %v1243_v36  ;;  %4221 = vst [vmem:[#allocation41_spill] sm:$0xff] %v3340_v47 }
 0x327   : > { %v3337_v36 = vadd.f32 %v1113_v45, %v3065_v27 }
 0x328   : > { %v1803_v51 = vpop.permute.xlu1 %1802  ;;  %v3358_v29 = vadd.f32 %v1253_v22, %v3096_v40  ;;  %v3361_v62 = vadd.f32 %v1254_v18, %v3098_v41  ;;  %v3364_v63 = vadd.f32 %v1255_v23, %v3100_v42  ;;  %v3367_v7 = vadd.f32 %v1256_v24, %v3102_v43  ;;  %v3381_v42 = vld [vmem:[%s4161_s4 + $0x1a8] sm:$0xff]  ;;  %v3386_v43 = vld [vmem:[%s4161_s4 + $0x1b0] sm:$0xff]  ;;  %v3439_v18 = vld [vmem:[%s4161_s4 + $0x218] sm:$0xff] }
 0x329   : > { %4220 = vst [vmem:[#allocation40_spill] sm:$0xff] %v3337_v36  ;;  %v4231_v49 = vld [vmem:[#allocation36_spill] sm:$0xff] }
 0x32a   : > { %v1320_v21 = vpop.permute.xlu0 %1319 }
 0x32b   : > { %v1330_v26 = vmul.f32 %v3312_v20, %v1320_v21  ;;  %v1331_v27 = vmul.f32 %v3321_v25, %v1320_v21  ;;  %v1332_v44 = vmul.f32 %v3326_v39, %v1320_v21  ;;  %v1333_v28 = vmul.f32 %v3331_v48, %v1320_v21 }
 0x32d   : > { %v960_v32 = vpop.permute.xlu1 %959  ;;  %v3406_v46 = vadd.f32 %v1330_v26, %v3131_v55  ;;  %v3409_v21 = vadd.f32 %v1331_v27, %v3133_v56  ;;  %v3412_v22 = vadd.f32 %v1332_v44, %v3135_v57  ;;  %v3429_v57 = vld [vmem:[%s4161_s4 + $0x208] sm:$0xff] }
 0x32e   : > { %v971_v45 = vmul.f32 %v960_v32, %v3129_v53  ;;  %v972_v40 = vmul.f32 %v960_v32, %v3142_v54  ;;  %v973_v9 = vmul.f32 %v960_v32, %v3147_v59  ;;  %v974_v41 = vmul.f32 %v960_v32, %v3152_v60  ;;  %v3391_v53 = vld [vmem:[%s4161_s4 + $0x1b8] sm:$0xff] }
 0x32f   : > { %v1525_v37 = vpop.permute.xlu0 %1524  ;;  %v3394_v54 = vmul.f32 %v3124_v52, %v1803_v51  ;;  %v3397_v32 = vmul.f32 %v3169_v4, %v1803_v51  ;;  %v3400_v59 = vmul.f32 %v3174_v5, %v1803_v51  ;;  %v3403_v60 = vmul.f32 %v3179_v6, %v1803_v51  ;;  %v3420_v5 = vld [vmem:[%s4161_s4 + $0x200] sm:$0xff] }
 0x330   : > { %v3415_v52 = vadd.f32 %v1333_v28, %v3137_v58  ;;  %v1535_v51 = vmul.f32 %v3372_v11, %v1525_v37  ;;  %v1536_v55 = vmul.f32 %v3381_v42, %v1525_v37  ;;  %v1537_v6 = vmul.f32 %v3386_v43, %v1525_v37  ;;  %v3434_v58 = vld [vmem:[%s4161_s4 + $0x210] sm:$0xff] }
 0x331   : > { %v1538_v56 = vmul.f32 %v3391_v53, %v1525_v37  ;;  %v3442_v23 = vadd.f32 %v971_v45, %v3035_v14  ;;  %v3445_v24 = vadd.f32 %v972_v40, %v3037_v15  ;;  %v3448_v26 = vadd.f32 %v973_v9, %v3039_v16  ;;  %v3476_v40 = vld [vmem:[%s4161_s4 + $0x260] sm:$0xff] }
 0x332   : > { %v1038_v4 = vpop.permute.xlu1 %1037  ;;  %v3451_v27 = vadd.f32 %v974_v41, %v3041_v17  ;;  %v3462_v17 = vadd.f32 %v1535_v51, %v3244_v61  ;;  %v4228_v51 = vld [vmem:[#allocation13_spill] sm:$0xff] }
 0x333   : > { %v1048_v28 = vmul.f32 %v3196_v12, %v1038_v4  ;;  %v1049_v37 = vmul.f32 %v3209_v2, %v1038_v4  ;;  %v1050_v50 = vmul.f32 %v3214_v30, %v1038_v4  ;;  %v1051_v47 = vmul.f32 %v3219_v31, %v1038_v4 }
 0x334   : > { %v1602_v44 = vpop.permute.xlu0 %1601  ;;  %v3465_v12 = vadd.f32 %v1536_v55, %v3247_v13  ;;  %v3468_v2 = vadd.f32 %v1537_v6, %v3250_v0  ;;  %v3471_v30 = vadd.f32 %v1538_v56, %v3253_v3  ;;  %v3485_v0 = vld [vmem:[%s4161_s4 + $0x268] sm:$0xff]  ;;  %v3490_v3 = vld [vmem:[%s4161_s4 + $0x270] sm:$0xff]  ;;  %v4229_v6 = vld [vmem:[#allocation14_spill] sm:$0xff] }
 0x335   : > { %v1612_v14 = vmul.f32 %v3420_v5, %v1602_v44  ;;  %v1613_v15 = vmul.f32 %v3429_v57, %v1602_v44  ;;  %v1614_v45 = vmul.f32 %v3434_v58, %v1602_v44  ;;  %v1615_v16 = vmul.f32 %v3439_v18, %v1602_v44 }
 0x336   : > { %4223 = vst [vmem:[#allocation43_spill] sm:$0xff] %v3465_v12  ;;  %4224 = vst [vmem:[#allocation44_spill] sm:$0xff] %v3468_v2  ;;  %v3504_v55 = vadd.f32 %v1050_v50, %v4228_v51  ;;  %v3507_v56 = vadd.f32 %v1051_v47, %v4229_v6  ;;  %v4232_v2 = vld [vmem:[#allocation37_spill] sm:$0xff]  ;;  %v4240_v6 = vld [vmem:[#allocation18_spill] sm:$0xff] }
 0x337   : > { %4225 = vst [vmem:[#allocation45_spill] sm:$0xff] %v3471_v30  ;;  %v1179_v31 = vpop.permute.xlu1 %1178  ;;  %v3513_v30 = vadd.f32 %v1613_v15, %v4231_v49  ;;  %v3516_v12 = vadd.f32 %v1614_v45, %v4232_v2  ;;  %v4234_v49 = vld [vmem:[#allocation15_spill] sm:$0xff]  ;;  %v4236_v45 = vld [vmem:[#allocation16_spill] sm:$0xff] }
 0x338   : > { %v1189_v9 = vmul.f32 %v3264_v38, %v1179_v31  ;;  %v1190_v61 = vmul.f32 %v3273_v10, %v1179_v31  ;;  %v1191_v41 = vmul.f32 %v3278_v1, %v1179_v31  ;;  %v1192_v13 = vmul.f32 %v3283_v8, %v1179_v31  ;;  %v3495_v38 = vld [vmem:[%s4161_s4 + $0x278] sm:$0xff]  ;;  %v4226_v10 = vld [vmem:[#allocation11_spill] sm:$0xff]  ;;  %v4227_v1 = vld [vmem:[#allocation12_spill] sm:$0xff] }
 0x339   : > { %v3498_v4 = vadd.f32 %v1048_v28, %v4226_v10  ;;  %v3501_v8 = vadd.f32 %v1049_v37, %v4227_v1  ;;  %v1807_v44 = vpop.permute.xlu0 %1806  ;;  %v4230_v31 = vld [vmem:[#allocation35_spill] sm:$0xff]  ;;  %v4233_v28 = vld [vmem:[#allocation38_spill] sm:$0xff] }
 0x33a   : > { %v3510_v36 = vadd.f32 %v1612_v14, %v4230_v31  ;;  %v3519_v10 = vadd.f32 %v1615_v16, %v4233_v28  ;;  %v1817_v37 = vmul.f32 %v3476_v40, %v1807_v44  ;;  %v1818_v50 = vmul.f32 %v3485_v0, %v1807_v44  ;;  %v3528_v14 = vld [vmem:[%s4161_s4 + $0x40] sm:$0x1f]  ;;  %v4238_v16 = vld [vmem:[#allocation17_spill] sm:$0xff] }
 0x33b   : > { %v1819_v47 = vmul.f32 %v3490_v3, %v1807_v44  ;;  %v1820_v1 = vmul.f32 %v3495_v38, %v1807_v44  ;;  %v3531_v15 = vadd.f32 %v1189_v9, %v4234_v49  ;;  %v3534_v2 = vadd.f32 %v1190_v61, %v4236_v45  ;;  %v3545_v44 = vld [vmem:[%s4161_s4 + $0x48] sm:$0x1f]  ;;  %v3550_v9 = vld [vmem:[%s4161_s4 + $0x50] sm:$0x1f]  ;;  %v3555_v61 = vld [vmem:[%s4161_s4 + $0x58] sm:$0x1f] }
 0x33c   : > { %v3537_v51 = vadd.f32 %v1191_v41, %v4238_v16  ;;  %v3540_v31 = vadd.f32 %v1192_v13, %v4240_v6  ;;  %v1384_v28 = vpop.permute.xlu1 %1383  ;;  %v3558_v41 = vadd.f32 %v1817_v37, %v3394_v54  ;;  %v3561_v13 = vadd.f32 %v1818_v50, %v3397_v32  ;;  %v4246_v50 = vld [vmem:[#allocation23_spill] sm:$0xff] }
 0x33d   : > { %4235 = vst [vmem:[#allocation11_spill] sm:$0xff] %v3531_v15  ;;  %4237 = vst [vmem:[#allocation12_spill] sm:$0xff] %v3534_v2  ;;  %v3564_v49 = vadd.f32 %v1819_v47, %v3400_v59  ;;  %v3567_v45 = vadd.f32 %v1820_v1, %v3403_v60  ;;  %v1394_v16 = vmul.f32 %v3312_v20, %v1384_v28  ;;  %v4248_v47 = vld [vmem:[#allocation24_spill] sm:$0xff] }
 0x33e   : > { %4239 = vst [vmem:[#allocation13_spill] sm:$0xff] %v3537_v51  ;;  %4241 = vst [vmem:[#allocation14_spill] sm:$0xff] %v3540_v31  ;;  %v1395_v6 = vmul.f32 %v3321_v25, %v1384_v28  ;;  %v1396_v31 = vmul.f32 %v3326_v39, %v1384_v28  ;;  %v1397_v51 = vmul.f32 %v3331_v48, %v1384_v28  ;;  %v965_v2 = vpop.permute.xlu0 %964  ;;  %v4250_v25 = vld [vmem:[#allocation25_spill] sm:$0xff]  ;;  %v4252_v39 = vld [vmem:[#allocation26_spill] sm:$0xff] }
 0x33f   : > { %4242 = vst [vmem:[#allocation35_spill] sm:$0xff] %v3558_v41  ;;  %4243 = vst [vmem:[#allocation36_spill] sm:$0xff] %v3561_v13  ;;  %v975_v54 = vmul.f32 %v965_v2, %v3528_v14  ;;  %v976_v32 = vmul.f32 %v965_v2, %v3545_v44  ;;  %v977_v37 = vmul.f32 %v965_v2, %v3550_v9 }
 0x340   : > { %4244 = vst [vmem:[#allocation37_spill] sm:$0xff] %v3564_v49  ;;  %4245 = vst [vmem:[#allocation38_spill] sm:$0xff] %v3567_v45  ;;  %v978_v59 = vmul.f32 %v965_v2, %v3555_v61  ;;  %v3578_v60 = vadd.f32 %v1394_v16, %v4246_v50  ;;  %v3581_v20 = vadd.f32 %v1395_v6, %v4248_v47 }
 0x341   : > { %v3584_v1 = vadd.f32 %v1396_v31, %v4250_v25  ;;  %v3587_v48 = vadd.f32 %v1397_v51, %v4252_v39  ;;  %v980_v28 = vsel %vm912_vm6, %v975_v54, 0.0  ;;  %v989_v15 = vsel %vm912_vm6, %v976_v32, 0.0  ;;  %v1461_v49 = vpop.permute.xlu1 %1460  ;;  %v4259_v25 = vld [vmem:[#allocation21_spill] sm:$0xff] }
 0x342   : > { %4247 = vst [vmem:[#allocation15_spill] sm:$0xff] %v3578_v60  ;;  %4249 = vst [vmem:[#allocation16_spill] sm:$0xff] %v3581_v20  ;;  %v998_v45 = vsel %vm912_vm6, %v977_v37, 0.0  ;;  %v1007_v2 = vsel %vm912_vm6, %v978_v59, 0.0  ;;  %v981_v16 = vadd.f32 %v980_v28, %v3442_v23  ;;  %v990_v6 = vadd.f32 %v989_v15, %v3445_v24  ;;  %v3604_v37 = vld [vmem:[%s4161_s4 + $0x100] sm:$0x1f] }
 0x343   : > { %4251 = vst [vmem:[#allocation17_spill] sm:$0xff] %v3584_v1  ;;  %4253 = vst [vmem:[#allocation18_spill] sm:$0xff] %v3587_v48  ;;  %v999_v50 = vadd.f32 %v998_v45, %v3448_v26  ;;  %v1008_v31 = vadd.f32 %v1007_v2, %v3451_v27  ;;  %v1471_v51 = vmul.f32 %v3372_v11, %v1461_v49  ;;  %v3609_v23 = vld [vmem:[%s4161_s4 + $0x108] sm:$0x1f]  ;;  %v3614_v11 = vld [vmem:[%s4161_s4 + $0x110] sm:$0x1f]  ;;  %v1247_v27 = vpop.permute.xlu0 %1246 }
 0x344   : > { %v1472_v47 = vmul.f32 %v3381_v42, %v1461_v49  ;;  %v1473_v54 = vmul.f32 %v3386_v43, %v1461_v49  ;;  %v1474_v32 = vmul.f32 %v3391_v53, %v1461_v49  ;;  %v982_v42 = vrot.slane %v981_v16, 4  ;;  %v3619_v53 = vld [vmem:[%s4161_s4 + $0x118] sm:$0x1f]  ;;  %v4255_v15 = vld [vmem:[#allocation19_spill] sm:$0xff]  ;;  %v4257_v45 = vld [vmem:[#allocation20_spill] sm:$0xff] }
 0x345   : > { %v991_v24 = vrot.slane %v990_v6, 4  ;;  %v1000_v43 = vrot.slane %v999_v50, 4  ;;  %v1009_v26 = vrot.slane %v1008_v31, 4  ;;  %4254 = vst [vmem:[#allocation23_spill] sm:$0xff] %v3619_v53  ;;  %v3622_v49 = vadd.f32 %v1471_v51, %v4255_v15  ;;  %v4261_v28 = vld [vmem:[#allocation22_spill] sm:$0xff] }
 0x346   : > { %v3625_v59 = vadd.f32 %v1472_v47, %v4257_v45  ;;  %v3628_v39 = vadd.f32 %v1473_v54, %v4259_v25  ;;  %v3631_v2 = vadd.f32 %v1474_v32, %v4261_v28  ;;  %v983_v48 = vadd.f32 %v982_v42, %v981_v16 }
 0x347   : > { %4256 = vst [vmem:[#allocation24_spill] sm:$0xff] %v3622_v49  ;;  %v992_v1 = vadd.f32 %v991_v24, %v990_v6  ;;  %v1001_v20 = vadd.f32 %v1000_v43, %v999_v50  ;;  %v1010_v60 = vadd.f32 %v1009_v26, %v1008_v31  ;;  %v1257_v13 = vmul.f32 %v3604_v37, %v1247_v27 }
 0x348   : > { %4258 = vst [vmem:[#allocation25_spill] sm:$0xff] %v3625_v59  ;;  %4260 = vst [vmem:[#allocation26_spill] sm:$0xff] %v3628_v39  ;;  %v1258_v41 = vmul.f32 %v3609_v23, %v1247_v27  ;;  %v1259_v51 = vmul.f32 %v3614_v11, %v1247_v27  ;;  %v1260_v15 = vmul.f32 %v3619_v53, %v1247_v27  ;;  %v984_v47 = vrot.slane %v983_v48, 2 }
 0x349   : > { %4262 = vst [vmem:[#allocation19_spill] sm:$0xff] %v3631_v2  ;;  %v993_v45 = vrot.slane %v992_v1, 2  ;;  %v1002_v59 = vrot.slane %v1001_v20, 2  ;;  %v1011_v54 = vrot.slane %v1010_v60, 2  ;;  %v1262_v25 = vsel %vm912_vm6, %v1257_v13, 0.0 }
 0x34a   : > { %v1271_v32 = vsel %vm912_vm6, %v1258_v41, 0.0  ;;  %v1280_v16 = vsel %vm912_vm6, %v1259_v51, 0.0  ;;  %v1289_v6 = vsel %vm912_vm6, %v1260_v15, 0.0  ;;  %v985_v50 = vadd.f32 %v984_v47, %v983_v48  ;;  %v1666_v48 = vpop.permute.xlu1 %1665 }
 0x34b   : > { %v994_v31 = vadd.f32 %v993_v45, %v992_v1  ;;  %v1003_v42 = vadd.f32 %v1002_v59, %v1001_v20  ;;  %v1012_v24 = vadd.f32 %v1011_v54, %v1010_v60  ;;  %v1263_v43 = vadd.f32 %v1262_v25, %v3358_v29 }
 0x34c   : > { %v1272_v26 = vadd.f32 %v1271_v32, %v3361_v62  ;;  %v1281_v27 = vadd.f32 %v1280_v16, %v3364_v63  ;;  %v1290_v28 = vadd.f32 %v1289_v6, %v3367_v7  ;;  %v986_v2 = vrot.slane %v985_v50, 1  ;;  %v1324_v32 = vpop.permute.xlu0 %1323 }
 0x34d   : > { %v995_v13 = vrot.slane %v994_v31, 1  ;;  %v1004_v39 = vrot.slane %v1003_v42, 1  ;;  %v1013_v41 = vrot.slane %v1012_v24, 1  ;;  %v1264_v49 = vrot.slane %v1263_v43, 4 }
 0x34e   : > { %v1273_v51 = vrot.slane %v1272_v26, 4  ;;  %v1282_v53 = vrot.slane %v1281_v27, 4  ;;  %v1291_v15 = vrot.slane %v1290_v28, 4  ;;  %v3645_v1 = vadd.f32 %v986_v2, %v985_v50  ;;  %v3660_v2 = vld [vmem:[%s4161_s4 + $0x160] sm:$0x1f] }
 0x34f   : > { %v3647_v60 = vadd.f32 %v995_v13, %v994_v31  ;;  %v3649_v29 = vadd.f32 %v1004_v39, %v1003_v42  ;;  %v3651_v62 = vadd.f32 %v1013_v41, %v1012_v24  ;;  %v1265_v63 = vadd.f32 %v1264_v49, %v1263_v43  ;;  %v3665_v49 = vld [vmem:[%s4161_s4 + $0x168] sm:$0x1f] }
 0x350   : > { %v1274_v20 = vadd.f32 %v1273_v51, %v1272_v26  ;;  %v1283_v7 = vadd.f32 %v1282_v53, %v1281_v27  ;;  %v1292_v59 = vadd.f32 %v1291_v15, %v1290_v28  ;;  %v1676_v47 = vmul.f32 %v3420_v5, %v1666_v48  ;;  %v3670_v5 = vld [vmem:[%s4161_s4 + $0x170] sm:$0x1f] }
 0x351   : > { %4263 = vst [vmem:[#allocation20_spill] sm:$0xff] %v3651_v62  ;;  %v1677_v45 = vmul.f32 %v3429_v57, %v1666_v48  ;;  %v1678_v54 = vmul.f32 %v3434_v58, %v1666_v48  ;;  %v1679_v25 = vmul.f32 %v3439_v18, %v1666_v48  ;;  %v1266_v57 = vrot.slane %v1265_v63, 2  ;;  %v3675_v18 = vld [vmem:[%s4161_s4 + $0x178] sm:$0x1f] }
 0x352   : > { %v1275_v53 = vrot.slane %v1274_v20, 2  ;;  %v1284_v58 = vrot.slane %v1283_v7, 2  ;;  %v1293_v39 = vrot.slane %v1292_v59, 2  ;;  %v3678_v16 = vadd.f32 %v1676_v47, %v3345_v19 }
 0x353   : > { %v3681_v6 = vadd.f32 %v1677_v45, %v3347_v33  ;;  %v3684_v50 = vadd.f32 %v1678_v54, %v3349_v34  ;;  %v3687_v31 = vadd.f32 %v1679_v25, %v3351_v35  ;;  %v1267_v42 = vadd.f32 %v1266_v57, %v1265_v63 }
 0x354   : > { %v1276_v24 = vadd.f32 %v1275_v53, %v1274_v20  ;;  %v1285_v43 = vadd.f32 %v1284_v58, %v1283_v7  ;;  %v1294_v26 = vadd.f32 %v1293_v39, %v1292_v59  ;;  %v1334_v27 = vmul.f32 %v3660_v2, %v1324_v32  ;;  %v1743_v20 = vpop.permute.xlu1 %1742 }
 0x355   : > { %v1335_v28 = vmul.f32 %v3665_v49, %v1324_v32  ;;  %v1336_v19 = vmul.f32 %v3670_v5, %v1324_v32  ;;  %v1337_v13 = vmul.f32 %v3675_v18, %v1324_v32  ;;  %v1268_v33 = vrot.slane %v1267_v42, 1 }
 0x356   : > { %v1277_v41 = vrot.slane %v1276_v24, 1  ;;  %v1286_v51 = vrot.slane %v1285_v43, 1  ;;  %v1295_v34 = vrot.slane %v1294_v26, 1  ;;  %v1339_v15 = vsel %vm912_vm6, %v1334_v27, 0.0  ;;  %v4270_v27 = vld [vmem:[#allocation28_spill] sm:$0xff] }
 0x357   : > { %v1348_v35 = vsel %vm912_vm6, %v1335_v28, 0.0  ;;  %v1357_v48 = vsel %vm912_vm6, %v1336_v19, 0.0  ;;  %v1366_v63 = vsel %vm912_vm6, %v1337_v13, 0.0  ;;  %v3697_v7 = vadd.f32 %v1268_v33, %v1267_v42  ;;  %v4272_v19 = vld [vmem:[#allocation29_spill] sm:$0xff]  ;;  %v4274_v33 = vld [vmem:[#allocation30_spill] sm:$0xff] }
 0x358   : > { %v3699_v59 = vadd.f32 %v1277_v41, %v1276_v24  ;;  %v3701_v47 = vadd.f32 %v1286_v51, %v1285_v43  ;;  %v3703_v45 = vadd.f32 %v1295_v34, %v1294_v26  ;;  %v1340_v54 = vadd.f32 %v1339_v15, %v3406_v46  ;;  %v3716_v24 = vld [vmem:[%s4161_s4 + $0x1c0] sm:$0x1f]  ;;  %v3721_v46 = vld [vmem:[%s4161_s4 + $0x1c8] sm:$0x1f] }
 0x359   : > { %4264 = vst [vmem:[#allocation21_spill] sm:$0xff] %v3697_v7  ;;  %v1349_v25 = vadd.f32 %v1348_v35, %v3409_v21  ;;  %v1358_v57 = vadd.f32 %v1357_v48, %v3412_v22  ;;  %v1367_v53 = vadd.f32 %v1366_v63, %v3415_v52  ;;  %v1753_v58 = vmul.f32 %v3476_v40, %v1743_v20  ;;  %v3726_v21 = vld [vmem:[%s4161_s4 + $0x1d0] sm:$0x1f]  ;;  %v4268_v43 = vld [vmem:[#allocation27_spill] sm:$0xff] }
 0x35a   : > { %4265 = vst [vmem:[#allocation22_spill] sm:$0xff] %v3699_v59  ;;  %4266 = vst [vmem:[#allocation46_spill] sm:$0xff] %v3701_v47  ;;  %v1754_v39 = vmul.f32 %v3485_v0, %v1743_v20  ;;  %v1755_v32 = vmul.f32 %v3490_v3, %v1743_v20  ;;  %v1756_v42 = vmul.f32 %v3495_v38, %v1743_v20  ;;  %v1341_v22 = vrot.slane %v1340_v54, 4  ;;  %v3731_v3 = vld [vmem:[%s4161_s4 + $0x1d8] sm:$0x1f]  ;;  %v1529_v38 = vpop.permute.xlu0 %1528  ;;  %v4279_v47 = vld [vmem:[#allocation45_spill] sm:$0xff] }
 0x35b   : > { %4267 = vst [vmem:[#allocation47_spill] sm:$0xff] %v3703_v45  ;;  %v1350_v52 = vrot.slane %v1349_v25, 4  ;;  %v1359_v40 = vrot.slane %v1358_v57, 4  ;;  %v1368_v0 = vrot.slane %v1367_v53, 4  ;;  %v3734_v26 = vadd.f32 %v1753_v58, %v4268_v43 }
 0x35c   : > { %v3737_v28 = vadd.f32 %v1754_v39, %v4270_v27  ;;  %v3740_v13 = vadd.f32 %v1755_v32, %v4272_v19  ;;  %v3743_v41 = vadd.f32 %v1756_v42, %v4274_v33  ;;  %v1342_v51 = vadd.f32 %v1341_v22, %v1340_v54  ;;  %v4278_v33 = vld [vmem:[#allocation44_spill] sm:$0xff] }
 0x35d   : > { %4269 = vst [vmem:[#allocation27_spill] sm:$0xff] %v3734_v26  ;;  %v1351_v34 = vadd.f32 %v1350_v52, %v1349_v25  ;;  %v1360_v15 = vadd.f32 %v1359_v40, %v1358_v57  ;;  %v1369_v35 = vadd.f32 %v1368_v0, %v1367_v53  ;;  %v1539_v48 = vmul.f32 %v3716_v24, %v1529_v38  ;;  %v4277_v0 = vld [vmem:[#allocation43_spill] sm:$0xff] }
 0x35e   : > { %4271 = vst [vmem:[#allocation28_spill] sm:$0xff] %v3737_v28  ;;  %4273 = vst [vmem:[#allocation29_spill] sm:$0xff] %v3740_v13  ;;  %v1540_v63 = vmul.f32 %v3721_v46, %v1529_v38  ;;  %v1541_v20 = vmul.f32 %v3726_v21, %v1529_v38  ;;  %v1542_v58 = vmul.f32 %v3731_v3, %v1529_v38  ;;  %v1343_v39 = vrot.slane %v1342_v51, 2 }
 0x35f   : > { %4275 = vst [vmem:[#allocation30_spill] sm:$0xff] %v3743_v41  ;;  %v1352_v43 = vrot.slane %v1351_v34, 2  ;;  %v1361_v27 = vrot.slane %v1360_v15, 2  ;;  %v1370_v32 = vrot.slane %v1369_v35, 2  ;;  %v1544_v19 = vsel %vm912_vm6, %v1539_v48, 0.0  ;;  %v897_v48 = vpop.permute.xlu1 %896 }
 0x360   : > { %v1553_v42 = vsel %vm912_vm6, %v1540_v63, 0.0  ;;  %v1562_v54 = vsel %vm912_vm6, %v1541_v20, 0.0  ;;  %v1571_v25 = vsel %vm912_vm6, %v1542_v58, 0.0  ;;  %v1344_v57 = vadd.f32 %v1343_v39, %v1342_v51 }
 0x361   : > { %v1353_v53 = vadd.f32 %v1352_v43, %v1351_v34  ;;  %v1362_v22 = vadd.f32 %v1361_v27, %v1360_v15  ;;  %v3753_v52 = vadd.f32 %v1370_v32, %v1369_v35  ;;  %v1545_v40 = vadd.f32 %v1544_v19, %v3462_v17 }
 0x362   : > { %v1554_v38 = vadd.f32 %v1553_v42, %v4277_v0  ;;  %v1563_v45 = vadd.f32 %v1562_v54, %v4278_v33  ;;  %v1572_v59 = vadd.f32 %v1571_v25, %v4279_v47  ;;  %v1345_v7 = vrot.slane %v1344_v57, 1 }
 0x363   : > { %4276 = vst [vmem:[#allocation48_spill] sm:$0xff] %v3753_v52  ;;  %v1354_v63 = vrot.slane %v1353_v53, 1  ;;  %v1363_v62 = vrot.slane %v1362_v22, 1  ;;  %v1546_v58 = vrot.slane %v1545_v40, 4  ;;  %v907_v43 = vmul.f32 %v897_v48, %v3528_v14 }
 0x364   : > { %v1555_v51 = vrot.slane %v1554_v38, 4  ;;  %v1564_v34 = vrot.slane %v1563_v45, 4  ;;  %v1573_v15 = vrot.slane %v1572_v59, 4  ;;  %v3760_v35 = vadd.f32 %v1345_v7, %v1344_v57 }
 0x365   : > { %v3762_v39 = vadd.f32 %v1354_v63, %v1353_v53  ;;  %v3764_v17 = vadd.f32 %v1363_v62, %v1362_v22  ;;  %v1547_v27 = vadd.f32 %v1546_v58, %v1545_v40  ;;  %v908_v42 = vmul.f32 %v897_v48, %v3545_v44  ;;  %v4283_v62 = vld [vmem:[#allocation31_spill] sm:$0xff]  ;;  %v4286_v58 = vld [vmem:[#allocation32_spill] sm:$0xff] }
 0x366   : > { %4280 = vst [vmem:[#allocation43_spill] sm:$0xff] %v3760_v35  ;;  %v1556_v47 = vadd.f32 %v1555_v51, %v1554_v38  ;;  %v1565_v32 = vadd.f32 %v1564_v34, %v1563_v45  ;;  %v1574_v19 = vadd.f32 %v1573_v15, %v1572_v59  ;;  %v909_v54 = vmul.f32 %v897_v48, %v3550_v9  ;;  %v3778_v44 = vld [vmem:[%s4161_s4 + $0x220] sm:$0x1f]  ;;  %v1606_v9 = vpop.permute.xlu0 %1605  ;;  %v4287_v34 = vld [vmem:[#allocation33_spill] sm:$0xff] }
 0x367   : > { %4281 = vst [vmem:[#allocation44_spill] sm:$0xff] %v3762_v39  ;;  %4282 = vst [vmem:[#allocation45_spill] sm:$0xff] %v3764_v17  ;;  %v910_v25 = vmul.f32 %v897_v48, %v3555_v61  ;;  %v913_v0 = vsel %vm912_vm6, %v907_v43, 0.0  ;;  %v1548_v7 = vrot.slane %v1547_v27, 2  ;;  %v922_v14 = vsel %vm912_vm6, %v908_v42, 0.0  ;;  %v4288_v43 = vld [vmem:[#allocation34_spill] sm:$0xff] }
 0x368   : > { %v1557_v57 = vrot.slane %v1556_v47, 2  ;;  %v1566_v53 = vrot.slane %v1565_v32, 2  ;;  %v1575_v33 = vrot.slane %v1574_v19, 2  ;;  %v914_v22 = vadd.f32 %v913_v0, %v4283_v62 }
 0x369   : > { %v931_v40 = vsel %vm912_vm6, %v909_v54, 0.0  ;;  %v940_v59 = vsel %vm912_vm6, %v910_v25, 0.0  ;;  %v1549_v61 = vadd.f32 %v1548_v7, %v1547_v27  ;;  %v923_v51 = vadd.f32 %v922_v14, %v4286_v58  ;;  %v3790_v54 = vld [vmem:[%s4161_s4 + $0x228] sm:$0x1f]  ;;  %v3795_v27 = vld [vmem:[%s4161_s4 + $0x230] sm:$0x1f] }
 0x36a   : > { %v1558_v45 = vadd.f32 %v1557_v57, %v1556_v47  ;;  %v3780_v38 = vadd.f32 %v1566_v53, %v1565_v32  ;;  %v3782_v48 = vadd.f32 %v1575_v33, %v1574_v19  ;;  %v915_v63 = vrot.slane %v914_v22, 4  ;;  %v3802_v33 = vld [vmem:[%s4161_s4 + $0x238] sm:$0x1f] }
 0x36b   : > { %v932_v15 = vadd.f32 %v931_v40, %v4287_v34  ;;  %v941_v42 = vadd.f32 %v940_v59, %v4288_v43  ;;  %v1550_v47 = vrot.slane %v1549_v61, 1  ;;  %v1616_v25 = vmul.f32 %v3778_v44, %v1606_v9 }
 0x36c   : > { %4284 = vst [vmem:[#allocation31_spill] sm:$0xff] %v3780_v38  ;;  %4285 = vst [vmem:[#allocation49_spill] sm:$0xff] %v3782_v48  ;;  %v1559_v32 = vrot.slane %v1558_v45, 1  ;;  %v916_v0 = vadd.f32 %v915_v63, %v914_v22  ;;  %v924_v7 = vrot.slane %v923_v51, 4  ;;  %v1617_v40 = vmul.f32 %v3790_v54, %v1606_v9 }
 0x36d   : > { %v933_v57 = vrot.slane %v932_v15, 4  ;;  %v942_v53 = vrot.slane %v941_v42, 4  ;;  %v3804_v62 = vadd.f32 %v1550_v47, %v1549_v61  ;;  %v1618_v59 = vmul.f32 %v3795_v27, %v1606_v9 }
 0x36e   : > { %v3806_v14 = vadd.f32 %v1559_v32, %v1558_v45  ;;  %v917_v58 = vrot.slane %v916_v0, 2  ;;  %v925_v34 = vadd.f32 %v924_v7, %v923_v51  ;;  %v1619_v63 = vmul.f32 %v3802_v33, %v1606_v9 }
 0x36f   : > { %4289 = vst [vmem:[#allocation32_spill] sm:$0xff] %v3804_v62  ;;  %v934_v43 = vadd.f32 %v933_v57, %v932_v15  ;;  %v943_v22 = vadd.f32 %v942_v53, %v941_v42  ;;  %v1621_v20 = vsel %vm912_vm6, %v1616_v25, 0.0  ;;  %v1630_v19 = vsel %vm912_vm6, %v1617_v40, 0.0 }
 0x370   : > { %4290 = vst [vmem:[#allocation33_spill] sm:$0xff] %v3806_v14  ;;  %v1639_v17 = vsel %vm912_vm6, %v1618_v59, 0.0  ;;  %v918_v61 = vadd.f32 %v917_v58, %v916_v0  ;;  %v926_v47 = vrot.slane %v925_v34, 2  ;;  %v1622_v39 = vadd.f32 %v1621_v20, %v3510_v36  ;;  %v3822_v59 = vld [vmem:[%s4161_s4 + $0xa0] sm:$0x1f]  ;;  %v1042_v36 = vpop.permute.xlu1 %1041 }
 0x371   : > { %v935_v45 = vrot.slane %v934_v43, 2  ;;  %v944_v32 = vrot.slane %v943_v22, 2  ;;  %v1631_v35 = vadd.f32 %v1630_v19, %v3513_v30  ;;  %v1640_v51 = vadd.f32 %v1639_v17, %v3516_v12  ;;  %v3829_v19 = vld [vmem:[%s4161_s4 + $0xa8] sm:$0x1f] }
 0x372   : > { %v1648_v15 = vsel %vm912_vm6, %v1619_v63, 0.0  ;;  %v919_v42 = vrot.slane %v918_v61, 1  ;;  %v927_v9 = vadd.f32 %v926_v47, %v925_v34  ;;  %v1623_v57 = vrot.slane %v1622_v39, 4  ;;  %v3839_v63 = vld [vmem:[%s4161_s4 + $0xb8] sm:$0x1f] }
 0x373   : > { %v936_v7 = vadd.f32 %v935_v45, %v934_v43  ;;  %v945_v25 = vadd.f32 %v944_v32, %v943_v22  ;;  %v1632_v53 = vrot.slane %v1631_v35, 4  ;;  %v1641_v40 = vrot.slane %v1640_v51, 4  ;;  %v3834_v22 = vld [vmem:[%s4161_s4 + $0xb0] sm:$0x1f] }
 0x374   : > { %v1649_v0 = vadd.f32 %v1648_v15, %v3519_v10  ;;  %v3824_v30 = vadd.f32 %v919_v42, %v918_v61  ;;  %v928_v12 = vrot.slane %v927_v9, 1  ;;  %v1624_v58 = vadd.f32 %v1623_v57, %v1622_v39  ;;  %v1106_v41 = vpop.permute.xlu1 %1105 }
 0x375   : > { %v937_v20 = vrot.slane %v936_v7, 1  ;;  %v946_v17 = vrot.slane %v945_v25, 1  ;;  %v1633_v34 = vadd.f32 %v1632_v53, %v1631_v35  ;;  %v1642_v43 = vadd.f32 %v1641_v40, %v1640_v51 }
 0x376   : > { %v1650_v10 = vrot.slane %v1649_v0, 4  ;;  %v3841_v61 = vadd.f32 %v928_v12, %v927_v9  ;;  %v1052_v35 = vmul.f32 %v3822_v59, %v1042_v36  ;;  %v1625_v39 = vrot.slane %v1624_v58, 2 }
 0x377   : > { %v3843_v47 = vadd.f32 %v937_v20, %v936_v7  ;;  %v3845_v45 = vadd.f32 %v946_v17, %v945_v25  ;;  %v1634_v32 = vrot.slane %v1633_v34, 2  ;;  %v1643_v51 = vrot.slane %v1642_v43, 2  ;;  %v3857_v7 = vld [vmem:[%s4161_s4 + $0x280] sm:$0x1f]  ;;  %v3869_v20 = vld [vmem:[%s4161_s4 + $0x288] sm:$0x1f]  ;;  %v1811_v17 = vpop.permute.xlu0 %1810 }
 0x378   : > { %v3848_v15 = vadd.f32 %v1650_v10, %v1649_v0  ;;  %v1053_v42 = vmul.f32 %v3829_v19, %v1042_v36  ;;  %v1054_v57 = vmul.f32 %v3834_v22, %v1042_v36  ;;  %v1055_v53 = vmul.f32 %v3839_v63, %v1042_v36  ;;  %4296 = vst [vmem:[#allocation54_spill] sm:$0xff] %v3869_v20  ;;  %v3874_v36 = vld [vmem:[%s4161_s4 + $0x290] sm:$0x1f] }
 0x379   : > { %4291 = vst [vmem:[#allocation34_spill] sm:$0xff] %v3845_v45  ;;  %v1057_v9 = vsel %vm912_vm6, %v1052_v35, 0.0  ;;  %v3859_v25 = vadd.f32 %v1625_v39, %v1624_v58  ;;  %v3861_v40 = vadd.f32 %v1634_v32, %v1633_v34  ;;  %v3863_v12 = vadd.f32 %v1643_v51, %v1642_v43  ;;  %4297 = vst [vmem:[#allocation55_spill] sm:$0xff] %v3874_v36  ;;  %v3883_v35 = vld [vmem:[%s4161_s4 + $0x298] sm:$0x1f] }
 0x37a   : > { %4292 = vst [vmem:[#allocation50_spill] sm:$0xff] %v3848_v15  ;;  %v1058_v58 = vadd.f32 %v1057_v9, %v3498_v4  ;;  %v1066_v34 = vsel %vm912_vm6, %v1053_v42, 0.0  ;;  %v1075_v43 = vsel %vm912_vm6, %v1054_v57, 0.0  ;;  %v1084_v10 = vsel %vm912_vm6, %v1055_v53, 0.0  ;;  %4298 = vst [vmem:[#allocation56_spill] sm:$0xff] %v3883_v35 }
 0x37b   : > { %4293 = vst [vmem:[#allocation51_spill] sm:$0xff] %v3859_v25  ;;  %4294 = vst [vmem:[#allocation52_spill] sm:$0xff] %v3861_v40  ;;  %v1067_v51 = vadd.f32 %v1066_v34, %v3501_v8  ;;  %v1076_v0 = vadd.f32 %v1075_v43, %v3504_v55  ;;  %v1085_v42 = vadd.f32 %v1084_v10, %v3507_v56  ;;  %v4299_v43 = vld [vmem:[#allocation35_spill] sm:$0xff]  ;;  %v4300_v10 = vld [vmem:[#allocation36_spill] sm:$0xff] }
 0x37c   : > { %4295 = vst [vmem:[#allocation53_spill] sm:$0xff] %v3863_v12  ;;  %v1059_v4 = vrot.slane %v1058_v58, 4  ;;  %v1821_v57 = vmul.f32 %v3857_v7, %v1811_v17  ;;  %v1822_v53 = vmul.f32 %v3869_v20, %v1811_v17  ;;  %v1823_v12 = vmul.f32 %v3874_v36, %v1811_v17 }
 0x37d   : > { %v1068_v9 = vrot.slane %v1067_v51, 4  ;;  %v1077_v15 = vrot.slane %v1076_v0, 4  ;;  %v1824_v52 = vmul.f32 %v3883_v35, %v1811_v17  ;;  %v1086_v25 = vrot.slane %v1085_v42, 4 }
 0x37e   : > { %v1060_v39 = vadd.f32 %v1059_v4, %v1058_v58  ;;  %v1826_v32 = vsel %vm912_vm6, %v1821_v57, 0.0  ;;  %v1835_v8 = vsel %vm912_vm6, %v1822_v53, 0.0  ;;  %v1844_v62 = vsel %vm912_vm6, %v1823_v12, 0.0  ;;  %v4301_v53 = vld [vmem:[#allocation37_spill] sm:$0xff] }
 0x37f   : > { %v1069_v55 = vadd.f32 %v1068_v9, %v1067_v51  ;;  %v1078_v34 = vadd.f32 %v1077_v15, %v1076_v0  ;;  %v1827_v56 = vadd.f32 %v1826_v32, %v4299_v43  ;;  %v1836_v40 = vadd.f32 %v1835_v8, %v4300_v10  ;;  %v4302_v15 = vld [vmem:[#allocation38_spill] sm:$0xff] }
 0x380   : > { %v1061_v45 = vrot.slane %v1060_v39, 2  ;;  %v1087_v14 = vadd.f32 %v1086_v25, %v1085_v42  ;;  %v1853_v48 = vsel %vm912_vm6, %v1824_v52, 0.0  ;;  %v1845_v51 = vadd.f32 %v1844_v62, %v4301_v53  ;;  %v4304_v53 = vld [vmem:[#allocation40_spill] sm:$0xff] }
 0x381   : > { %v1070_v38 = vrot.slane %v1069_v55, 2  ;;  %v1079_v17 = vrot.slane %v1078_v34, 2  ;;  %v1828_v58 = vrot.slane %v1827_v56, 4  ;;  %v1837_v4 = vrot.slane %v1836_v40, 4 }
 0x382   : > { %v1062_v57 = vadd.f32 %v1061_v45, %v1060_v39  ;;  %v1088_v13 = vrot.slane %v1087_v14, 2  ;;  %v1854_v0 = vadd.f32 %v1853_v48, %v4302_v15  ;;  %v1846_v12 = vrot.slane %v1845_v51, 4 }
 0x383   : > { %v1071_v32 = vadd.f32 %v1070_v38, %v1069_v55  ;;  %v1080_v9 = vadd.f32 %v1079_v17, %v1078_v34  ;;  %v1829_v8 = vadd.f32 %v1828_v58, %v1827_v56  ;;  %v1838_v43 = vadd.f32 %v1837_v4, %v1836_v40  ;;  %v1183_v40 = vpop.permute.xlu1 %1182  ;;  %v4303_v4 = vld [vmem:[#allocation39_spill] sm:$0xff] }
 0x384   : > { %v1063_v25 = vrot.slane %v1062_v57, 1  ;;  %v1089_v42 = vadd.f32 %v1088_v13, %v1087_v14  ;;  %v1855_v10 = vrot.slane %v1854_v0, 4  ;;  %v3902_v45 = vadd.f32 %v1846_v12, %v1845_v51  ;;  %v4305_v51 = vld [vmem:[#allocation41_spill] sm:$0xff] }
 0x385   : > { %v1072_v52 = vrot.slane %v1071_v32, 1  ;;  %v1081_v28 = vrot.slane %v1080_v9, 1  ;;  %v1830_v26 = vrot.slane %v1829_v8, 2  ;;  %v1839_v35 = vrot.slane %v1838_v43, 2 }
 0x386   : > { %v1064_v36 = vadd.f32 %v1063_v25, %v1062_v57  ;;  %v1090_v20 = vrot.slane %v1089_v42, 1  ;;  %v3904_v39 = vadd.f32 %v1855_v10, %v1854_v0  ;;  %v1848_v34 = vrot.slane %v3902_v45, 2  ;;  %v4308_v25 = vld [vmem:[#allocation11_spill] sm:$0xff] }
 0x387   : > { %v1073_v62 = vadd.f32 %v1072_v52, %v1071_v32  ;;  %v1082_v48 = vadd.f32 %v1081_v28, %v1080_v9  ;;  %v3906_v38 = vadd.f32 %v1830_v26, %v1829_v8  ;;  %v3908_v55 = vadd.f32 %v1839_v35, %v1838_v43 }
 0x388   : > { %v3910_v13 = vadd.f32 %v1090_v20, %v1089_v42  ;;  %v3913_v14 = vadd.f32 %v1064_v36, %v3824_v30  ;;  %v1116_v56 = vmul.f32 %v3822_v59, %v1106_v41  ;;  %v1117_v26 = vmul.f32 %v3829_v19, %v1106_v41 }
 0x389   : > { %v3918_v17 = vadd.f32 %v1073_v62, %v3841_v61  ;;  %v3921_v58 = vadd.f32 %v1082_v48, %v3843_v47  ;;  %v1118_v28 = vmul.f32 %v3834_v22, %v1106_v41  ;;  %v1119_v20 = vmul.f32 %v3839_v63, %v1106_v41  ;;  %v4306_v63 = vld [vmem:[#allocation23_spill] sm:$0xff] }
 0x38a   : > { %v1121_v35 = vsel %vm912_vm6, %v1116_v56, 0.0  ;;  %v1193_v30 = vmul.f32 %v3604_v37, %v1183_v40  ;;  %v1194_v36 = vmul.f32 %v3609_v23, %v1183_v40  ;;  %v1130_v61 = vsel %vm912_vm6, %v1117_v26, 0.0  ;;  %v4307_v37 = vld [vmem:[#allocation42_spill] sm:$0xff] }
 0x38b   : > { %v1122_v59 = vadd.f32 %v1121_v35, %v4303_v4  ;;  %v1139_v57 = vsel %vm912_vm6, %v1118_v28, 0.0  ;;  %v1195_v47 = vmul.f32 %v3614_v11, %v1183_v40  ;;  %v1131_v19 = vadd.f32 %v1130_v61, %v4304_v53  ;;  %v4309_v11 = vld [vmem:[#allocation12_spill] sm:$0xff]  ;;  %v4311_v4 = vld [vmem:[#allocation14_spill] sm:$0xff] }
 0x38c   : > { %v1140_v22 = vadd.f32 %v1139_v57, %v4305_v51  ;;  %v1148_v41 = vsel %vm912_vm6, %v1119_v20, 0.0  ;;  %v1196_v15 = vmul.f32 %v4306_v63, %v1183_v40  ;;  %v1198_v23 = vsel %vm912_vm6, %v1193_v30, 0.0  ;;  %v4310_v30 = vld [vmem:[#allocation13_spill] sm:$0xff] }
 0x38d   : > { %v1123_v0 = vrot.slane %v1122_v59, 4  ;;  %v1149_v32 = vadd.f32 %v1148_v41, %v4307_v37  ;;  %v1207_v9 = vsel %vm912_vm6, %v1194_v36, 0.0  ;;  %v1132_v8 = vrot.slane %v1131_v19, 4 }
 0x38e   : > { %v1141_v43 = vrot.slane %v1140_v22, 4  ;;  %v1199_v42 = vadd.f32 %v1198_v23, %v4308_v25  ;;  %v1208_v12 = vadd.f32 %v1207_v9, %v4309_v11  ;;  %v1216_v62 = vsel %vm912_vm6, %v1195_v47, 0.0 }
 0x38f   : > { %v1124_v10 = vadd.f32 %v1123_v0, %v1122_v59  ;;  %v1150_v52 = vrot.slane %v1149_v32, 4  ;;  %v1225_v48 = vsel %vm912_vm6, %v1196_v15, 0.0  ;;  %v1133_v40 = vadd.f32 %v1132_v8, %v1131_v19 }
 0x390   : > { %v1142_v56 = vadd.f32 %v1141_v43, %v1140_v22  ;;  %v1200_v26 = vrot.slane %v1199_v42, 4  ;;  %v1209_v28 = vrot.slane %v1208_v12, 4  ;;  %v1217_v36 = vadd.f32 %v1216_v62, %v4310_v30  ;;  %v1388_v62 = vpop.permute.xlu1 %1387 }
 0x391   : > { %v1125_v20 = vrot.slane %v1124_v10, 2  ;;  %v1151_v35 = vadd.f32 %v1150_v52, %v1149_v32  ;;  %v1226_v61 = vadd.f32 %v1225_v48, %v4311_v4  ;;  %v1134_v57 = vrot.slane %v1133_v40, 2 }
 0x392   : > { %v1143_v53 = vrot.slane %v1142_v56, 2  ;;  %v1201_v51 = vadd.f32 %v1200_v26, %v1199_v42  ;;  %v1210_v41 = vadd.f32 %v1209_v28, %v1208_v12  ;;  %v1218_v0 = vrot.slane %v1217_v36, 4 }
 0x393   : > { %v1126_v59 = vadd.f32 %v1125_v20, %v1124_v10  ;;  %v1152_v63 = vrot.slane %v1151_v35, 2  ;;  %v1227_v47 = vrot.slane %v1226_v61, 4  ;;  %v1135_v37 = vadd.f32 %v1134_v57, %v1133_v40 }
 0x394   : > { %v1144_v15 = vadd.f32 %v1143_v53, %v1142_v56  ;;  %v1202_v19 = vrot.slane %v1201_v51, 2  ;;  %v1211_v22 = vrot.slane %v1210_v41, 2  ;;  %v1219_v8 = vadd.f32 %v1218_v0, %v1217_v36 }
 0x395   : > { %v1127_v23 = vrot.slane %v1126_v59, 1  ;;  %v1153_v9 = vadd.f32 %v1152_v63, %v1151_v35  ;;  %v1228_v32 = vadd.f32 %v1227_v47, %v1226_v61  ;;  %v1136_v43 = vrot.slane %v1135_v37, 1 }
 0x396   : > { %v1145_v25 = vrot.slane %v1144_v15, 1  ;;  %v1203_v11 = vadd.f32 %v1202_v19, %v1201_v51  ;;  %v1212_v52 = vadd.f32 %v1211_v22, %v1210_v41  ;;  %v1220_v12 = vrot.slane %v1219_v8, 2 }
 0x397   : > { %v1128_v48 = vadd.f32 %v1127_v23, %v1126_v59  ;;  %v1154_v42 = vrot.slane %v1153_v9, 1  ;;  %v1229_v10 = vrot.slane %v1228_v32, 2  ;;  %v1137_v26 = vadd.f32 %v1136_v43, %v1135_v37 }
 0x398   : > { %v1146_v28 = vadd.f32 %v1145_v25, %v1144_v15  ;;  %v1204_v20 = vrot.slane %v1203_v11, 1  ;;  %v1213_v40 = vrot.slane %v1212_v52, 1  ;;  %v1221_v35 = vadd.f32 %v1220_v12, %v1219_v8 }
 0x399   : > { %v3946_v56 = vadd.f32 %v1154_v42, %v1153_v9  ;;  %v3949_v30 = vadd.f32 %v1128_v48, %v3645_v1  ;;  %v1230_v36 = vadd.f32 %v1229_v10, %v1228_v32  ;;  %v3952_v4 = vadd.f32 %v1137_v26, %v3647_v60 }
 0x39a   : > { %v3955_v61 = vadd.f32 %v1146_v28, %v3649_v29  ;;  %v1205_v57 = vadd.f32 %v1204_v20, %v1203_v11  ;;  %v1214_v53 = vadd.f32 %v1213_v40, %v1212_v52  ;;  %v1222_v51 = vrot.slane %v1221_v35, 1  ;;  %v1465_v29 = vpop.permute.xlu1 %1464  ;;  %v4316_v40 = vld [vmem:[#allocation24_spill] sm:$0xff] }
 0x39b   : > { %v1231_v41 = vrot.slane %v1230_v36, 1  ;;  %v1398_v59 = vmul.f32 %v3660_v2, %v1388_v62  ;;  %v1399_v63 = vmul.f32 %v3665_v49, %v1388_v62  ;;  %v1400_v60 = vmul.f32 %v3670_v5, %v1388_v62  ;;  %v4312_v49 = vld [vmem:[#allocation15_spill] sm:$0xff]  ;;  %v4314_v5 = vld [vmem:[#allocation17_spill] sm:$0xff] }
 0x39c   : > { %v3960_v0 = vadd.f32 %v1205_v57, %v3913_v14  ;;  %v3963_v1 = vadd.f32 %v1214_v53, %v3918_v17  ;;  %v1401_v47 = vmul.f32 %v3675_v18, %v1388_v62  ;;  %v3967_v37 = vadd.f32 %v1222_v51, %v1221_v35  ;;  %v4313_v14 = vld [vmem:[#allocation16_spill] sm:$0xff]  ;;  %v4315_v18 = vld [vmem:[#allocation18_spill] sm:$0xff] }
 0x39d   : > { %v3969_v15 = vadd.f32 %v1231_v41, %v1230_v36  ;;  %v1403_v19 = vsel %vm912_vm6, %v1398_v59, 0.0  ;;  %v1412_v2 = vsel %vm912_vm6, %v1399_v63, 0.0  ;;  %v1421_v17 = vsel %vm912_vm6, %v1400_v60, 0.0  ;;  %v4317_v36 = vld [vmem:[#allocation25_spill] sm:$0xff] }
 0x39e   : > { %v1404_v22 = vadd.f32 %v1403_v19, %v4312_v49  ;;  %v1413_v23 = vadd.f32 %v1412_v2, %v4313_v14  ;;  %v1430_v9 = vsel %vm912_vm6, %v1401_v47, 0.0  ;;  %v1422_v8 = vadd.f32 %v1421_v17, %v4314_v5  ;;  %v4318_v47 = vld [vmem:[#allocation26_spill] sm:$0xff]  ;;  %v4319_v19 = vld [vmem:[#allocation19_spill] sm:$0xff] }
 0x39f   : > { %v1431_v32 = vadd.f32 %v1430_v9, %v4315_v18  ;;  %v1475_v43 = vmul.f32 %v3716_v24, %v1465_v29  ;;  %v1476_v25 = vmul.f32 %v3721_v46, %v1465_v29  ;;  %v1477_v62 = vmul.f32 %v3726_v21, %v1465_v29  ;;  %v1670_v18 = vpop.permute.xlu1 %1669 }
 0x3a0   : > { %v1405_v11 = vrot.slane %v1404_v22, 4  ;;  %v1414_v52 = vrot.slane %v1413_v23, 4  ;;  %v1478_v48 = vmul.f32 %v3731_v3, %v1465_v29  ;;  %v1423_v42 = vrot.slane %v1422_v8, 4 }
 0x3a1   : > { %v1432_v12 = vrot.slane %v1431_v32, 4  ;;  %v1480_v10 = vsel %vm912_vm6, %v1475_v43, 0.0  ;;  %v1489_v26 = vsel %vm912_vm6, %v1476_v25, 0.0  ;;  %v1498_v53 = vsel %vm912_vm6, %v1477_v62, 0.0 }
 0x3a2   : > { %v1406_v28 = vadd.f32 %v1405_v11, %v1404_v22  ;;  %v1415_v20 = vadd.f32 %v1414_v52, %v1413_v23  ;;  %v1481_v35 = vadd.f32 %v1480_v10, %v4316_v40  ;;  %v1490_v24 = vadd.f32 %v1489_v26, %v4317_v36 }
 0x3a3   : > { %v1424_v57 = vadd.f32 %v1423_v42, %v1422_v8  ;;  %v1433_v46 = vadd.f32 %v1432_v12, %v1431_v32  ;;  %v1507_v21 = vsel %vm912_vm6, %v1478_v48, 0.0  ;;  %v1499_v29 = vadd.f32 %v1498_v53, %v4318_v47 }
 0x3a4   : > { %v1407_v51 = vrot.slane %v1406_v28, 2  ;;  %v1416_v3 = vrot.slane %v1415_v20, 2  ;;  %v1482_v41 = vrot.slane %v1481_v35, 4  ;;  %v1491_v59 = vrot.slane %v1490_v24, 4 }
 0x3a5   : > { %v1425_v63 = vrot.slane %v1424_v57, 2  ;;  %v1434_v60 = vrot.slane %v1433_v46, 2  ;;  %v1508_v2 = vadd.f32 %v1507_v21, %v4319_v19  ;;  %v1500_v5 = vrot.slane %v1499_v29, 4 }
 0x3a6   : > { %v1408_v49 = vadd.f32 %v1407_v51, %v1406_v28  ;;  %v1417_v22 = vadd.f32 %v1416_v3, %v1415_v20  ;;  %v1483_v14 = vadd.f32 %v1482_v41, %v1481_v35  ;;  %v1492_v23 = vadd.f32 %v1491_v59, %v1490_v24  ;;  %v1747_v59 = vpop.permute.xlu1 %1746 }
 0x3a7   : > { %v1426_v17 = vadd.f32 %v1425_v63, %v1424_v57  ;;  %v3991_v9 = vadd.f32 %v1434_v60, %v1433_v46  ;;  %v1509_v8 = vrot.slane %v1508_v2, 4  ;;  %v1501_v48 = vadd.f32 %v1500_v5, %v1499_v29 }
 0x3a8   : > { %v1409_v32 = vrot.slane %v1408_v49, 1  ;;  %v1418_v43 = vrot.slane %v1417_v22, 1  ;;  %v1484_v25 = vrot.slane %v1483_v14, 2  ;;  %v1493_v11 = vrot.slane %v1492_v23, 2 }
 0x3a9   : > { %v1427_v52 = vrot.slane %v1426_v17, 1  ;;  %v1436_v62 = vrot.slane %v3991_v9, 1  ;;  %v1510_v42 = vadd.f32 %v1509_v8, %v1508_v2  ;;  %v1502_v40 = vrot.slane %v1501_v48, 2  ;;  %v4322_v8 = vld [vmem:[#allocation56_spill] sm:$0xff] }
 0x3aa   : > { %v3994_v12 = vadd.f32 %v1409_v32, %v1408_v49  ;;  %v3996_v10 = vadd.f32 %v1418_v43, %v1417_v22  ;;  %v1485_v26 = vadd.f32 %v1484_v25, %v1483_v14  ;;  %v1494_v28 = vadd.f32 %v1493_v11, %v1492_v23  ;;  %v4320_v23 = vld [vmem:[#allocation54_spill] sm:$0xff] }
 0x3ab   : > { %v3998_v20 = vadd.f32 %v1427_v52, %v1426_v17  ;;  %v1511_v35 = vrot.slane %v1510_v42, 2  ;;  %v1680_v36 = vmul.f32 %v3778_v44, %v1670_v18  ;;  %v1681_v46 = vmul.f32 %v3790_v54, %v1670_v18  ;;  %v4321_v17 = vld [vmem:[#allocation55_spill] sm:$0xff] }
 0x3ac   : > { %v1486_v24 = vrot.slane %v1485_v26, 1  ;;  %v1495_v57 = vrot.slane %v1494_v28, 1  ;;  %v1682_v53 = vmul.f32 %v3795_v27, %v1670_v18  ;;  %v4003_v21 = vadd.f32 %v1502_v40, %v1501_v48  ;;  %v4323_v52 = vld [vmem:[#allocation27_spill] sm:$0xff] }
 0x3ad   : > { %v4005_v51 = vadd.f32 %v1511_v35, %v1510_v42  ;;  %v1683_v3 = vmul.f32 %v3802_v33, %v1670_v18  ;;  %v1685_v41 = vsel %vm912_vm6, %v1680_v36, 0.0  ;;  %v1694_v47 = vsel %vm912_vm6, %v1681_v46, 0.0 }
 0x3ae   : > { %v4009_v63 = vadd.f32 %v1486_v24, %v1485_v26  ;;  %v4011_v60 = vadd.f32 %v1495_v57, %v1494_v28  ;;  %v1686_v44 = vadd.f32 %v1685_v41, %v3678_v16  ;;  %v1504_v54 = vrot.slane %v4003_v21, 1  ;;  %v4324_v28 = vld [vmem:[#allocation28_spill] sm:$0xff]  ;;  %v4325_v24 = vld [vmem:[#allocation29_spill] sm:$0xff] }
 0x3af   : > { %v1695_v27 = vadd.f32 %v1694_v47, %v3681_v6  ;;  %v1703_v29 = vsel %vm912_vm6, %v1682_v53, 0.0  ;;  %v1712_v19 = vsel %vm912_vm6, %v1683_v3, 0.0  ;;  %v1757_v22 = vmul.f32 %v3857_v7, %v1747_v59 }
 0x3b0   : > { %v1687_v33 = vrot.slane %v1686_v44, 4  ;;  %v1704_v2 = vadd.f32 %v1703_v29, %v3684_v50  ;;  %v1713_v49 = vadd.f32 %v1712_v19, %v3687_v31  ;;  %v1758_v16 = vmul.f32 %v4320_v23, %v1747_v59  ;;  %v4326_v29 = vld [vmem:[#allocation30_spill] sm:$0xff] }
 0x3b1   : > { %v1696_v14 = vrot.slane %v1695_v27, 4  ;;  %v1759_v5 = vmul.f32 %v4321_v17, %v1747_v59  ;;  %v1760_v18 = vmul.f32 %v4322_v8, %v1747_v59  ;;  %v1762_v25 = vsel %vm912_vm6, %v1757_v22, 0.0  ;;  %v4327_v22 = vld [vmem:[#allocation20_spill] sm:$0xff] }
 0x3b2   : > { %v1688_v32 = vadd.f32 %v1687_v33, %v1686_v44  ;;  %v1705_v6 = vrot.slane %v1704_v2, 4  ;;  %v1714_v43 = vrot.slane %v1713_v49, 4  ;;  %v1763_v48 = vadd.f32 %v1762_v25, %v4323_v52  ;;  %v4330_v25 = vld [vmem:[#allocation46_spill] sm:$0xff] }
 0x3b3   : > { %v1697_v11 = vadd.f32 %v1696_v14, %v1695_v27  ;;  %v1771_v50 = vsel %vm912_vm6, %v1758_v16, 0.0  ;;  %v1780_v31 = vsel %vm912_vm6, %v1759_v5, 0.0  ;;  %v1789_v46 = vsel %vm912_vm6, %v1760_v18, 0.0  ;;  %v4328_v18 = vld [vmem:[#allocation21_spill] sm:$0xff] }
 0x3b4   : > { %v1689_v7 = vrot.slane %v1688_v32, 2  ;;  %v1706_v42 = vadd.f32 %v1705_v6, %v1704_v2  ;;  %v1715_v26 = vadd.f32 %v1714_v43, %v1713_v49  ;;  %v1772_v40 = vadd.f32 %v1771_v50, %v4324_v28  ;;  %v4329_v6 = vld [vmem:[#allocation22_spill] sm:$0xff]  ;;  %v4331_v50 = vld [vmem:[#allocation47_spill] sm:$0xff] }
 0x3b5   : > { %v1698_v35 = vrot.slane %v1697_v11, 2  ;;  %v1764_v36 = vrot.slane %v1763_v48, 4  ;;  %v1781_v57 = vadd.f32 %v1780_v31, %v4325_v24  ;;  %v1790_v19 = vadd.f32 %v1789_v46, %v4326_v29  ;;  %v4332_v28 = vld [vmem:[#allocation31_spill] sm:$0xff] }
 0x3b6   : > { %v1690_v53 = vadd.f32 %v1689_v7, %v1688_v32  ;;  %v1707_v3 = vrot.slane %v1706_v42, 2  ;;  %v1716_v41 = vrot.slane %v1715_v26, 2  ;;  %v1773_v59 = vrot.slane %v1772_v40, 4 }
 0x3b7   : > { %v1699_v44 = vadd.f32 %v1698_v35, %v1697_v11  ;;  %v1765_v47 = vadd.f32 %v1764_v36, %v1763_v48  ;;  %v1782_v27 = vrot.slane %v1781_v57, 4  ;;  %v1159_v14 = vadd.f32 %v3946_v56, %v4327_v22  ;;  %v4334_v36 = vld [vmem:[#allocation49_spill] sm:$0xff] }
 0x3b8   : > { %v1691_v33 = vrot.slane %v1690_v53, 1  ;;  %v1708_v2 = vadd.f32 %v1707_v3, %v1706_v42  ;;  %v1774_v49 = vadd.f32 %v1773_v59, %v1772_v40  ;;  %v1791_v5 = vrot.slane %v1790_v19, 4  ;;  %v4335_v3 = vld [vmem:[#allocation32_spill] sm:$0xff] }
 0x3b9   : > { %v1700_v23 = vrot.slane %v1699_v44, 1  ;;  %v1766_v16 = vrot.slane %v1765_v47, 2  ;;  %v4035_v17 = vadd.f32 %v1782_v27, %v1781_v57  ;;  %v1297_v32 = vadd.f32 %v4328_v18, %v3949_v30 }
 0x3ba   : > { %v1775_v8 = vrot.slane %v1774_v49, 2  ;;  %v1298_v43 = vadd.f32 %v4329_v6, %v3952_v4  ;;  %v1299_v11 = vadd.f32 %v4330_v25, %v3955_v61  ;;  %v4046_v56 = vadd.f32 %v1791_v5, %v1790_v19  ;;  %v4338_v25 = vld [vmem:[#allocation48_spill] sm:$0xff] }
 0x3bb   : > { %v4043_v52 = vadd.f32 %v1766_v16, %v1765_v47  ;;  %v1784_v48 = vrot.slane %v4035_v17, 2  ;;  %v1300_v31 = vadd.f32 %v4331_v50, %v1159_v14  ;;  %v1437_v30 = vadd.f32 %v1436_v62, %v3991_v9  ;;  %v4336_v47 = vld [vmem:[#allocation33_spill] sm:$0xff]  ;;  %v4340_v50 = vld [vmem:[#allocation43_spill] sm:$0xff] }
 0x3bc   : > { %v4049_v7 = vadd.f32 %v1775_v8, %v1774_v49  ;;  %v1438_v42 = vadd.f32 %v3994_v12, %v1297_v32  ;;  %v1439_v4 = vadd.f32 %v3996_v10, %v1298_v43  ;;  %v1440_v61 = vadd.f32 %v3998_v20, %v1299_v11 }
 0x3bd   : > { %v4333_v40 = vrot.slane %v4332_v28, 1  ;;  %v1577_v24 = vrot.slane %v4334_v36, 1  ;;  %v1692_v57 = vadd.f32 %v1691_v33, %v1690_v53  ;;  %v1441_v46 = vadd.f32 %v1437_v30, %v1300_v31 }
 0x3be   : > { %v1579_v59 = vadd.f32 %v4335_v3, %v1438_v42  ;;  %v1580_v27 = vadd.f32 %v4336_v47, %v1439_v4  ;;  %v1701_v29 = vadd.f32 %v1700_v23, %v1699_v44  ;;  %v1709_v12 = vrot.slane %v1708_v2, 1  ;;  %v4342_v4 = vld [vmem:[#allocation45_spill] sm:$0xff]  ;;  %v4343_v3 = vld [vmem:[#allocation51_spill] sm:$0xff] }
 0x3bf   : > { %v1569_v35 = vadd.f32 %v4333_v40, %v4332_v28  ;;  %v1578_v9 = vadd.f32 %v1577_v24, %v4334_v36  ;;  %v1717_v10 = vadd.f32 %v1716_v41, %v1715_v26  ;;  %v1832_v49 = vrot.slane %v3906_v38, 1  ;;  %v4337_v26 = vld [vmem:[#allocation34_spill] sm:$0xff] }
 0x3c0   : > { %v1720_v19 = vadd.f32 %v1692_v57, %v1579_v59  ;;  %v1721_v20 = vadd.f32 %v1701_v29, %v1580_v27  ;;  %v1841_v22 = vrot.slane %v3908_v55, 1  ;;  %v1710_v16 = vadd.f32 %v1709_v12, %v1708_v2 }
 0x3c1   : > { %v1581_v62 = vadd.f32 %v1569_v35, %v1440_v61  ;;  %v1582_v14 = vadd.f32 %v1578_v9, %v1441_v46  ;;  %v1718_v53 = vrot.slane %v1717_v10, 1  ;;  %v1849_v33 = vadd.f32 %v1848_v34, %v3902_v45 }
 0x3c2   : > { %v1833_v44 = vadd.f32 %v1832_v49, %v3906_v38  ;;  %v1842_v23 = vadd.f32 %v1841_v22, %v3908_v55  ;;  %v1857_v5 = vrot.slane %v3904_v39, 2  ;;  %v1095_v41 = vadd.f32 %v3910_v13, %v4337_v26 }
 0x3c3   : > { %v1719_v8 = vadd.f32 %v1718_v53, %v1717_v10  ;;  %v1722_v18 = vadd.f32 %v1710_v16, %v1581_v62  ;;  %v1850_v32 = vrot.slane %v1849_v33, 1  ;;  %v1235_v2 = vadd.f32 %v3967_v37, %v3921_v58  ;;  %v4341_v37 = vld [vmem:[#allocation44_spill] sm:$0xff]  ;;  %v4347_v62 = vld [vmem:[#allocation53_spill] sm:$0xff]  ;;  %v4348_v10 = vld [vmem:[#allocation50_spill] sm:$0xff] }
 0x3c4   : > { %v1858_v6 = vadd.f32 %v1857_v5, %v3904_v39  ;;  %v4077_v43 = vadd.f32 %v1833_v44, %v1720_v19  ;;  %v4079_v45 = vadd.f32 %v1842_v23, %v1721_v20  ;;  %v1236_v38 = vadd.f32 %v3969_v15, %v1095_v41 }
 0x3c5   : > { %v1723_v55 = vadd.f32 %v1719_v8, %v1582_v14  ;;  %v1851_v34 = vadd.f32 %v1850_v32, %v1849_v33  ;;  %v4339_v11 = vrot.slane %v4338_v25, 1  ;;  %v1374_v31 = vadd.f32 %v4340_v50, %v3960_v0 }
 0x3c6   : > { %v1859_v30 = vrot.slane %v1858_v6, 1  ;;  %v1879_v58 = vmul.f32 %v4077_v43, %v4077_v43  ;;  %v1880_v39 = vmul.f32 %v4079_v45, %v4079_v45  ;;  %v1375_v42 = vadd.f32 %v4341_v37, %v3963_v1 }
 0x3c7   : > { %v1373_v13 = vadd.f32 %v4339_v11, %v4338_v25  ;;  %v4093_v15 = vadd.f32 %v1851_v34, %v1722_v18  ;;  %v1376_v61 = vadd.f32 %v4342_v4, %v1235_v2  ;;  %v1505_v40 = vadd.f32 %v1504_v54, %v4003_v21  ;;  %v4345_v21 = vld [vmem:[#allocation52_spill] sm:$0xff] }
 0x3c8   : > { %v1860_v0 = vadd.f32 %v1859_v30, %v1858_v6  ;;  %v1883_v35 = vadd.f32 %v1880_v39, %v1879_v58  ;;  %v1513_v36 = vrot.slane %v4005_v51, 1  ;;  %v1515_v24 = vadd.f32 %v4009_v63, %v1374_v31 }
 0x3c9   : > { %v1377_v28 = vadd.f32 %v1373_v13, %v1236_v38  ;;  %v1881_v57 = vmul.f32 %v4093_v15, %v4093_v15  ;;  %v1516_v1 = vadd.f32 %v4011_v60, %v1375_v42  ;;  %v1517_v46 = vadd.f32 %v1505_v40, %v1376_v61 }
 0x3ca   : > { %v4344_v59 = vrot.slane %v4343_v3, 1  ;;  %v1864_v27 = vadd.f32 %v1860_v0, %v1723_v55  ;;  %v1514_v29 = vadd.f32 %v1513_v36, %v4005_v51  ;;  %v4346_v54 = vrot.slane %v4345_v21, 1 }
 0x3cb   : > { %v1645_v12 = vrot.slane %v4347_v62, 1  ;;  %v1884_v63 = vadd.f32 %v1883_v35, %v1881_v57  ;;  %v4349_v19 = vrot.slane %v4348_v10, 2  ;;  %v1768_v49 = vrot.slane %v4043_v52, 1 }
 0x3cc   : > { %v1628_v47 = vadd.f32 %v4344_v59, %v4343_v3  ;;  %v1637_v9 = vadd.f32 %v4346_v54, %v4345_v21  ;;  %v1882_v22 = vmul.f32 %v1864_v27, %v1864_v27  ;;  %v1518_v14 = vadd.f32 %v1514_v29, %v1377_v28 }
 0x3cd   : > { %v1653_v20 = vadd.f32 %v4349_v19, %v4348_v10  ;;  %v1646_v16 = vadd.f32 %v1645_v12, %v4347_v62  ;;  %v1769_v33 = vadd.f32 %v1768_v49, %v4043_v52  ;;  %v1777_v44 = vrot.slane %v4049_v7, 1 }
 0x3ce   : > { %v1656_v60 = vadd.f32 %v1628_v47, %v1515_v24  ;;  %v1657_v53 = vadd.f32 %v1637_v9, %v1516_v1  ;;  %v1785_v23 = vadd.f32 %v1784_v48, %v4035_v17  ;;  %v1885_v5 = vadd.f32 %v1884_v63, %v1882_v22 }
 0x3cf   : > { %v1654_v51 = vrot.slane %v1653_v20, 1  ;;  %v1658_v26 = vadd.f32 %v1646_v16, %v1517_v46  ;;  %v1793_v41 = vrot.slane %v4046_v56, 2  ;;  %v1778_v18 = vadd.f32 %v1777_v44, %v4049_v7 }
 0x3d0   : > { %v1786_v32 = vrot.slane %v1785_v23, 1  ;;  %v1797_v2 = vadd.f32 %v1769_v33, %v1656_v60  ;;  %1886 = vadd.xlane.f32.xlu0 %v1885_v5 }
 0x3d1   : > { %v1655_v8 = vadd.f32 %v1654_v51, %v1653_v20  ;;  %v1794_v6 = vadd.f32 %v1793_v41, %v4046_v56  ;;  %v1798_v55 = vadd.f32 %v1778_v18, %v1657_v53 }
 0x3d2   : > { %v1787_v52 = vadd.f32 %v1786_v32, %v1785_v23  ;;  %v1865_v34 = vmul.f32 %v1797_v2, %v1797_v2 }
 0x3d3   : > { %v1659_v38 = vadd.f32 %v1655_v8, %v1518_v14  ;;  %v1795_v25 = vrot.slane %v1794_v6, 1  ;;  %v1866_v13 = vmul.f32 %v1798_v55, %v1798_v55 }
 0x3d4   : > { %v1799_v11 = vadd.f32 %v1787_v52, %v1658_v26 }
 0x3d5   : > { %v1796_v17 = vadd.f32 %v1795_v25, %v1794_v6  ;;  %v1869_v50 = vadd.f32 %v1866_v13, %v1865_v34 }
 0x3d6   : > { %v1867_v48 = vmul.f32 %v1799_v11, %v1799_v11 }
 0x3d7   : > { %v1800_v31 = vadd.f32 %v1796_v17, %v1659_v38 }
 0x3d8   : > { %v1870_v30 = vadd.f32 %v1869_v50, %v1867_v48 }
 0x3d9   : > { %v1868_v58 = vmul.f32 %v1800_v31, %v1800_v31 }
 0x3db   : > { %v1871_v39 = vadd.f32 %v1870_v30, %v1868_v58 }
 0x3dd   : > { %1872 = vadd.xlane.f32.xlu1 %v1871_v39 }
 0x45d   : > { %v1887_v7 = vpop.xlane.xlu0 %1886 }
 0x45e   : > { %2341 = vrsqrt.f32 %v1887_v7 }
 0x468   : > { %v2342_v56 = vpop.eup %2341 }
 0x469   : > { %v1889_v4 = vmul.f32 %v2342_v56, %v4077_v43  ;;  %v1890_v0 = vmul.f32 %v2342_v56, %v4079_v45  ;;  %v1891_v36 = vmul.f32 %v2342_v56, %v4093_v15  ;;  %v1892_v1 = vmul.f32 %v2342_v56, %v1864_v27 }
 0x46a   : > { %v1873_v37 = vpop.xlane.xlu1 %1872 }
 0x46b   : > { %2343 = vrsqrt.f32 %v1873_v37 }
 0x475   : > { %v2344_v42 = vpop.eup %2343 }
 0x476   : > { %v1875_v61 = vmul.f32 %v2344_v42, %v1797_v2  ;;  %v1876_v28 = vmul.f32 %v2344_v42, %v1798_v55  ;;  %v1877_v40 = vmul.f32 %v2344_v42, %v1799_v11  ;;  %v1878_v35 = vmul.f32 %v2344_v42, %v1800_v31 }
 0x478   : > { %v1893_v24 = vmul.f32 %v1889_v4, %v1875_v61  ;;  %v1894_v57 = vmul.f32 %v1890_v0, %v1876_v28  ;;  %v1895_v46 = vmul.f32 %v1891_v36, %v1877_v40  ;;  %v1896_v59 = vmul.f32 %v1892_v1, %v1878_v35 }
 0x47a   : > { %v1897_v3 = vadd.f32 %v1894_v57, %v1893_v24 }
 0x47c   : > { %v1898_v47 = vadd.f32 %v1897_v3, %v1895_v46 }
 0x47e   : > { %v1899_v29 = vadd.f32 %v1898_v47, %v1896_v59 }
 0x480   : > { %1900 = vadd.xlane.f32.xlu0 %v1899_v29 }
 0x50d   : > { %v1901_v43 = vpop.xlane.xlu0 %1900 }
 0x50e   : > { %v1902_v21 = vsub.f32 1.0, %v1901_v43 }
 0x510   : > { %1904 = vst.msk [vmem:[%s324_s14] sm:$0x1] %vm1903_vm7, %v1902_v21 }
 0x511 PF: > { %s21_s25 = sadd.s32 1, %s2475_s25   ;;  %s4350_s10 = sld [smem:[#allocation10_spill]] }
 0x512   : > { %p18_p3 = scmp.ge.s32.totalorder %s21_s25, 10   ;;  %s4351_s18 = smov %s2451_s19 }
 0x513   : > { %s4352_s19 = smov %s2455_s20  ;;  %s4353_s20 = smov %s2589_s12 }
 0x514   : > { %s4354_s21 = smov %s2467_s23  ;;  %s4355_s22 = smov %s2471_s24 }
 0x515   : > { %s4356_s23 = smov %s4359_s27  ;;  %20 = sbr.rel (!%p18_p3) target bundleno = 9 (0x9), region = 110 }
 0x517   : > { %s4357_s24 = smov %s4350_s10 }
 0x51c   :  { %1922 = vsyncpa [#allocation5], 1 }
 0x51d   :  { %1924 = vsyncpa [#allocation5 + $0x1], 1 }
 0x51e   :  { %1925 = vsyncpa [#allocation7], 1 }
 0x51f   :  { %1927 = vsyncpa [#allocation7 + $0x1], 1 }

</bundles_post_ra>
